<compile_context>
chip_gen: v7x
topology: tpu7x:2x2x1
jax: 0.10.0
libtpu: 0.0.40
codegen_flags: <defaults>
</compile_context>

<pallas_src>
import jax
import jax.numpy as jnp
from jax.experimental import pallas as pl
from jax.experimental.pallas import tpu as pltpu

_LANE = 128


def _dwconv_kernel(x_ref, top_ref, bot_ref, w_ref, b_ref, o_ref, xpad_ref):
    # x_ref:    (1, tH, W, tC)   interior rows of this H-tile (native dtype)
    # top_ref:  (1, 1, W, tC)    row just above the tile (clamped; masked at h==0)
    # bot_ref:  (1, 1, W, tC)    row just below the tile (clamped; masked at h==nH-1)
    # w_ref:    (3, 3, tC)       per-channel 3x3 weights
    # b_ref:    (1, 1, tC)       per-channel bias (f32)
    # o_ref:    (1, tH, W, tC)   output block
    # xpad_ref: (tH+2, W, tC)    VMEM scratch: H-padded working tile
    tH = o_ref.shape[1]
    W = o_ref.shape[2]
    tC = o_ref.shape[3]

    h = pl.program_id(1)
    nH = pl.num_programs(1)

    # --- assemble the (tH+2, W, tC) working tile (zero rows at the image border) ---
    xpad_ref[1:tH + 1] = x_ref[0]

    @pl.when(h > 0)
    def _():
        xpad_ref[0] = top_ref[0, 0]

    @pl.when(h == 0)
    def _():
        xpad_ref[0] = jnp.zeros((W, tC), xpad_ref.dtype)

    @pl.when(h < nH - 1)
    def _():
        xpad_ref[tH + 1] = bot_ref[0, 0]

    @pl.when(h == nH - 1)
    def _():
        xpad_ref[tH + 1] = jnp.zeros((W, tC), xpad_ref.dtype)

    x_full = xpad_ref[...]                                   # loaded once, native dtype

    # --- 3 width-shifted variants, computed once (W border handled with a zero column) ---
    zcol = jnp.zeros((tH + 2, 1, tC), x_full.dtype)
    x_l = jnp.concatenate([zcol, x_full[:, :W - 1, :]], axis=1)   # value at w is x[w-1]
    x_r = jnp.concatenate([x_full[:, 1:, :], zcol], axis=1)       # value at w is x[w+1]

    wf = w_ref[...]                                          # (3, 3, tC), read once

    # f32 accumulator initialized with the bias (no separate bias-add pass).
    # Per-tap products stay in the input dtype (bf16 stays bf16 on v6e/v7x), the add
    # promotes into the f32 accumulator.
    acc = jnp.broadcast_to(b_ref[...].astype(jnp.float32), (tH, W, tC))
    for ky in range(3):
        acc = acc + x_l[ky:ky + tH] * wf[ky:ky + 1, 0:1, :]
        acc = acc + x_full[ky:ky + tH] * wf[ky:ky + 1, 1:2, :]
        acc = acc + x_r[ky:ky + tH] * wf[ky:ky + 1, 2:3, :]

    o_ref[0] = acc.astype(o_ref.dtype)


def _choose_tile_h(H, W, tC, itemsize, budget_bytes):
    """Largest tH dividing H whose pipelined working set fits the VMEM budget."""
    def est(th):
        blk_in = th * W * tC * itemsize            # center input block
        halo = 2 * W * tC * itemsize               # two halo rows
        blk_out = th * W * tC * itemsize           # output block
        scratch = (th + 2) * W * tC * itemsize     # H-padded working tile
        # x_l, x_r copies + f32 accumulator inside the kernel
        work = (2 * (th + 2) + th) * W * tC * max(itemsize, 4)
        return 2 * (blk_in + halo + blk_out) + scratch + work   # x2 = double buffering
    for th in range(H, 0, -1):
        if H % th == 0 and est(th) <= budget_bytes:
            return th
    return 1


def dwconv_pallas_nhwc(x_nhwc, weight, bias, tile_h=None):
    """Depthwise 3x3 conv (stride 1, pad 1, groups=C) on NHWC input.

    x_nhwc: (N, H, W, C)
    weight: (C, 1, 3, 3)   -- PyTorch depthwise Conv2d weight layout
    bias:   (C,)
    returns (N, H, W, C)
    """
    N, H, W, C = x_nhwc.shape
    Cp = -(-C // _LANE) * _LANE                       # lane-dense channel count

    # Small-C models get padded up to 128 lanes; dim=768 (module default) needs no pad.
    if Cp != C:
        x_nhwc = jnp.pad(x_nhwc, ((0, 0), (0, 0), (0, 0), (0, Cp - C)))

    w_hwc = jnp.transpose(weight[:, 0, :, :], (1, 2, 0)).astype(x_nhwc.dtype)  # (3,3,C)
    b = bias.astype(jnp.float32)
    if Cp != C:
        w_hwc = jnp.pad(w_hwc, ((0, 0), (0, 0), (0, Cp - C)))
        b = jnp.pad(b, (0, Cp - C))
    b_11c = b.reshape(1, 1, Cp)

    tC = _LANE
    nC = Cp // tC
    itemsize = jnp.dtype(x_nhwc.dtype).itemsize
    if tile_h is None:
        tH = _choose_tile_h(H, W, tC, itemsize, budget_bytes=16 * 1024 * 1024)
    else:
        assert H % tile_h == 0, "tile_h must divide H"
        tH = tile_h
    nH = H // tH

    out = pl.pallas_call(
        _dwconv_kernel,
        out_shape=jax.ShapeDtypeStruct((N, H, W, Cp), x_nhwc.dtype),
        grid_spec=pltpu.PrefetchScalarGridSpec(
            num_scalar_prefetch=0,
            grid=(N, nH, nC),
            in_specs=[
                # interior rows of the H-tile
                pl.BlockSpec((1, tH, W, tC), lambda n, h, c: (n, h, 0, c)),
                # 1-row top halo (clamped at the image edge; masked in-kernel)
                pl.BlockSpec((1, 1, W, tC),
                             lambda n, h, c: (n, jnp.maximum(h * tH - 1, 0), 0, c)),
                # 1-row bottom halo (clamped at the image edge; masked in-kernel)
                pl.BlockSpec((1, 1, W, tC),
                             lambda n, h, c: (n, jnp.minimum(h * tH + tH, H - 1), 0, c)),
                pl.BlockSpec((3, 3, tC), lambda n, h, c: (0, 0, c)),
                pl.BlockSpec((1, 1, tC), lambda n, h, c: (0, 0, c)),
            ],
            out_specs=pl.BlockSpec((1, tH, W, tC), lambda n, h, c: (n, h, 0, c)),
            scratch_shapes=[pltpu.VMEM((tH + 2, W, tC), x_nhwc.dtype)],
        ),
        compiler_params=pltpu.CompilerParams(
            dimension_semantics=("parallel", "parallel", "parallel"),
            vmem_limit_bytes=32 * 1024 * 1024,
        ),
    )(x_nhwc, x_nhwc, x_nhwc, w_hwc, b_11c)

    if Cp != C:
        out = out[..., :C]
    return out


def dwconv_pallas(x_nchw, weight, bias, tile_h=None):
    """NCHW wrapper for PyTorch-layout parity.

    In a real NHWC-resident model, call dwconv_pallas_nhwc directly and skip these two
    transposes (each is a full HBM pass around a memory-bound op).
    """
    x_nhwc = jnp.transpose(x_nchw, (0, 2, 3, 1))
    out_nhwc = dwconv_pallas_nhwc(x_nhwc, weight, bias, tile_h=tile_h)
    return jnp.transpose(out_nhwc, (0, 3, 1, 2))


def _reference(x, weight, bias, C):
    return jax.lax.conv_general_dilated(
        x, weight, window_strides=(1, 1), padding=((1, 1), (1, 1)),
        dimension_numbers=("NCHW", "OIHW", "NCHW"), feature_group_count=C,
    ) + bias.reshape(1, C, 1, 1)


if __name__ == "__main__":
    key = jax.random.PRNGKey(0)
    k_x, k_w, k_b, k_x2, k_w2, k_b2 = jax.random.split(key, 6)

    # Test 1: module-spec-like small shape (C padded to 128 lanes internally).
    N, C, H, W = 2, 4, 16, 16
    x = jax.random.normal(k_x, (N, C, H, W), dtype=jnp.float32)
    weight = jax.random.normal(k_w, (C, 1, 3, 3), dtype=jnp.float32) * 0.1
    bias = jax.random.normal(k_b, (C,), dtype=jnp.float32) * 0.1

    out = jax.block_until_ready(dwconv_pallas(x, weight, bias))
    ref = _reference(x, weight, bias, C)
    assert out.shape == (N, C, H, W)
    assert jnp.allclose(out, ref, atol=1e-5, rtol=1e-5), "mismatch vs reference conv (test 1)"

    # Test 2: lane-dense C (2 C-tiles) with forced H tiling to exercise the halo path.
    N2, C2, H2, W2 = 1, 256, 32, 16
    x2 = jax.random.normal(k_x2, (N2, C2, H2, W2), dtype=jnp.float32)
    weight2 = jax.random.normal(k_w2, (C2, 1, 3, 3), dtype=jnp.float32) * 0.1
    bias2 = jax.random.normal(k_b2, (C2,), dtype=jnp.float32) * 0.1

    out2 = jax.block_until_ready(dwconv_pallas(x2, weight2, bias2, tile_h=8))
    ref2 = _reference(x2, weight2, bias2, C2)
    assert jnp.allclose(out2, ref2, atol=1e-4, rtol=1e-4), "mismatch vs reference conv (test 2)"

    print("KERNEL_OK")
</pallas_src>

<mosaic_0001>
module attributes {stable_mosaic.version = 11 : i64} {
  func.func @_dwconv_kernel(%arg0: i32, %arg1: i32, %arg2: i32, %arg3: memref<1x16x16x128xf32, #tpu.memory_space<vmem>>, %arg4: memref<1x1x16x128xf32, #tpu.memory_space<vmem>>, %arg5: memref<1x1x16x128xf32, #tpu.memory_space<vmem>>, %arg6: memref<3x3x128xf32, #tpu.memory_space<vmem>>, %arg7: memref<1x1x128xf32, #tpu.memory_space<vmem>>, %arg8: memref<1x16x16x128xf32, #tpu.memory_space<vmem>>, %arg9: memref<18x16x128xf32, #tpu.memory_space<vmem>>) attributes {dimension_semantics = [#tpu.dimension_semantics<parallel>, #tpu.dimension_semantics<parallel>, #tpu.dimension_semantics<parallel>], iteration_bounds = array<i64: 2, 1, 1>, scalar_prefetch = 0 : i64, scratch_operands = 1 : i64, tpu.core_type = #tpu.core_type<tc>, window_params = [{transform_indices = @transform_0, window_bounds = array<i64: 1, 16, 16, 128>}, {transform_indices = @transform_1, window_bounds = array<i64: 1, 1, 16, 128>}, {transform_indices = @transform_2, window_bounds = array<i64: 1, 1, 16, 128>}, {transform_indices = @transform_3, window_bounds = array<i64: 3, 3, 128>}, {transform_indices = @transform_4, window_bounds = array<i64: 1, 1, 128>}, {transform_indices = @transform_5, window_bounds = array<i64: 1, 16, 16, 128>}]} {
    %c0 = arith.constant 0 : index
    %c0_0 = arith.constant 0 : index
    %c0_1 = arith.constant 0 : index
    %c0_2 = arith.constant 0 : index
    %0 = vector.load %arg3[%c0, %c0_0, %c0_1, %c0_2] : memref<1x16x16x128xf32, #tpu.memory_space<vmem>>, vector<1x16x16x128xf32>
    %1 = vector.shape_cast %0 : vector<1x16x16x128xf32> to vector<16x16x128xf32>
    %c1 = arith.constant 1 : index
    %c0_3 = arith.constant 0 : index
    %c0_4 = arith.constant 0 : index
    %2 = vector.load %arg9[%c1, %c0_3, %c0_4] : memref<18x16x128xf32, #tpu.memory_space<vmem>>, vector<16x16x128xf32>
    tpu.vector_store %arg9[%c1, %c0_3, %c0_4], %1 {strides = array<i32>} : memref<18x16x128xf32, #tpu.memory_space<vmem>>, vector<16x16x128xf32>,
    %c0_i32 = arith.constant 0 : i32
    %3 = arith.cmpi sgt, %arg1, %c0_i32 : i32
    %4 = arith.extui %3 : i1 to i32
    %c0_i32_5 = arith.constant 0 : i32
    %5 = arith.cmpi ne, %4, %c0_i32_5 : i32
    scf.if %5 {
      %c0_25 = arith.constant 0 : index
      %c0_26 = arith.constant 0 : index
      %c0_27 = arith.constant 0 : index
      %c0_28 = arith.constant 0 : index
      %73 = vector.load %arg4[%c0_25, %c0_26, %c0_27, %c0_28] : memref<1x1x16x128xf32, #tpu.memory_space<vmem>>, vector<1x1x16x128xf32>
      %74 = vector.shape_cast %73 : vector<1x1x16x128xf32> to vector<16x128xf32>
      %c0_29 = arith.constant 0 : index
      %c0_30 = arith.constant 0 : index
      %c0_31 = arith.constant 0 : index
      %75 = vector.load %arg9[%c0_29, %c0_30, %c0_31] : memref<18x16x128xf32, #tpu.memory_space<vmem>>, vector<1x16x128xf32>
      %76 = vector.shape_cast %75 : vector<1x16x128xf32> to vector<16x128xf32>
      %77 = vector.shape_cast %74 : vector<16x128xf32> to vector<1x16x128xf32>
      tpu.vector_store %arg9[%c0_29, %c0_30, %c0_31], %77 {strides = array<i32>} : memref<18x16x128xf32, #tpu.memory_space<vmem>>, vector<1x16x128xf32>,
    } else {
    }
    %c0_i32_6 = arith.constant 0 : i32
    %6 = arith.cmpi eq, %arg1, %c0_i32_6 : i32
    %7 = arith.extui %6 : i1 to i32
    %c0_i32_7 = arith.constant 0 : i32
    %8 = arith.cmpi ne, %7, %c0_i32_7 : i32
    scf.if %8 {
      %cst_25 = arith.constant 0.000000e+00 : f32
      %73 = vector.broadcast %cst_25 : f32 to vector<16x128xf32>
      %c0_26 = arith.constant 0 : index
      %c0_27 = arith.constant 0 : index
      %c0_28 = arith.constant 0 : index
      %74 = vector.load %arg9[%c0_26, %c0_27, %c0_28] : memref<18x16x128xf32, #tpu.memory_space<vmem>>, vector<1x16x128xf32>
      %75 = vector.shape_cast %74 : vector<1x16x128xf32> to vector<16x128xf32>
      %76 = vector.shape_cast %73 : vector<16x128xf32> to vector<1x16x128xf32>
      tpu.vector_store %arg9[%c0_26, %c0_27, %c0_28], %76 {strides = array<i32>} : memref<18x16x128xf32, #tpu.memory_space<vmem>>, vector<1x16x128xf32>,
    } else {
    }
    %c0_i32_8 = arith.constant 0 : i32
    %9 = arith.cmpi slt, %arg1, %c0_i32_8 : i32
    %10 = arith.extui %9 : i1 to i32
    %c0_i32_9 = arith.constant 0 : i32
    %11 = arith.cmpi ne, %10, %c0_i32_9 : i32
    scf.if %11 {
      %c0_25 = arith.constant 0 : index
      %c0_26 = arith.constant 0 : index
      %c0_27 = arith.constant 0 : index
      %c0_28 = arith.constant 0 : index
      %73 = vector.load %arg5[%c0_25, %c0_26, %c0_27, %c0_28] : memref<1x1x16x128xf32, #tpu.memory_space<vmem>>, vector<1x1x16x128xf32>
      %74 = vector.shape_cast %73 : vector<1x1x16x128xf32> to vector<16x128xf32>
      %c17 = arith.constant 17 : index
      %c0_29 = arith.constant 0 : index
      %c0_30 = arith.constant 0 : index
      %75 = vector.load %arg9[%c17, %c0_29, %c0_30] : memref<18x16x128xf32, #tpu.memory_space<vmem>>, vector<1x16x128xf32>
      %76 = vector.shape_cast %75 : vector<1x16x128xf32> to vector<16x128xf32>
      %77 = vector.shape_cast %74 : vector<16x128xf32> to vector<1x16x128xf32>
      tpu.vector_store %arg9[%c17, %c0_29, %c0_30], %77 {strides = array<i32>} : memref<18x16x128xf32, #tpu.memory_space<vmem>>, vector<1x16x128xf32>,
    } else {
    }
    %c0_i32_10 = arith.constant 0 : i32
    %12 = arith.cmpi eq, %arg1, %c0_i32_10 : i32
    %13 = arith.extui %12 : i1 to i32
    %c0_i32_11 = arith.constant 0 : i32
    %14 = arith.cmpi ne, %13, %c0_i32_11 : i32
    scf.if %14 {
      %cst_25 = arith.constant 0.000000e+00 : f32
      %73 = vector.broadcast %cst_25 : f32 to vector<16x128xf32>
      %c17 = arith.constant 17 : index
      %c0_26 = arith.constant 0 : index
      %c0_27 = arith.constant 0 : index
      %74 = vector.load %arg9[%c17, %c0_26, %c0_27] : memref<18x16x128xf32, #tpu.memory_space<vmem>>, vector<1x16x128xf32>
      %75 = vector.shape_cast %74 : vector<1x16x128xf32> to vector<16x128xf32>
      %76 = vector.shape_cast %73 : vector<16x128xf32> to vector<1x16x128xf32>
      tpu.vector_store %arg9[%c17, %c0_26, %c0_27], %76 {strides = array<i32>} : memref<18x16x128xf32, #tpu.memory_space<vmem>>, vector<1x16x128xf32>,
    } else {
    }
    %c0_12 = arith.constant 0 : index
    %c0_13 = arith.constant 0 : index
    %c0_14 = arith.constant 0 : index
    %15 = vector.load %arg9[%c0_12, %c0_13, %c0_14] : memref<18x16x128xf32, #tpu.memory_space<vmem>>, vector<18x16x128xf32>
    %cst = arith.constant 0.000000e+00 : f32
    %16 = vector.broadcast %cst : f32 to vector<18x1x128xf32>
    %17 = vector.extract_strided_slice %15 {offsets = [0, 0, 0], sizes = [18, 15, 128], strides = [1, 1, 1]} : vector<18x16x128xf32> to vector<18x15x128xf32>
    %18 = tpu.concatenate %16, %17 in 1 : vector<18x1x128xf32>, vector<18x15x128xf32> -> vector<18x16x128xf32>
    %19 = vector.extract_strided_slice %15 {offsets = [0, 1, 0], sizes = [18, 15, 128], strides = [1, 1, 1]} : vector<18x16x128xf32> to vector<18x15x128xf32>
    %20 = tpu.concatenate %19, %16 in 1 : vector<18x15x128xf32>, vector<18x1x128xf32> -> vector<18x16x128xf32>
    %c0_15 = arith.constant 0 : index
    %c0_16 = arith.constant 0 : index
    %c0_17 = arith.constant 0 : index
    %21 = vector.load %arg6[%c0_15, %c0_16, %c0_17] : memref<3x3x128xf32, #tpu.memory_space<vmem>>, vector<3x3x128xf32>
    %c0_18 = arith.constant 0 : index
    %c0_19 = arith.constant 0 : index
    %c0_20 = arith.constant 0 : index
    %22 = vector.load %arg7[%c0_18, %c0_19, %c0_20] : memref<1x1x128xf32, #tpu.memory_space<vmem>>, vector<1x1x128xf32>
    %23 = vector.shape_cast %22 : vector<1x1x128xf32> to vector<1x1x128xf32>
    %24 = vector.broadcast %23 : vector<1x1x128xf32> to vector<16x16x128xf32>
    %25 = vector.extract_strided_slice %18 {offsets = [0, 0, 0], sizes = [16, 16, 128], strides = [1, 1, 1]} : vector<18x16x128xf32> to vector<16x16x128xf32>
    %26 = vector.extract_strided_slice %21 {offsets = [0, 0, 0], sizes = [1, 1, 128], strides = [1, 1, 1]} : vector<3x3x128xf32> to vector<1x1x128xf32>
    %27 = vector.broadcast %26 : vector<1x1x128xf32> to vector<16x16x128xf32>
    %28 = arith.mulf %25, %27 : vector<16x16x128xf32>
    %29 = arith.addf %24, %28 : vector<16x16x128xf32>
    %30 = vector.extract_strided_slice %15 {offsets = [0, 0, 0], sizes = [16, 16, 128], strides = [1, 1, 1]} : vector<18x16x128xf32> to vector<16x16x128xf32>
    %31 = vector.extract_strided_slice %21 {offsets = [0, 1, 0], sizes = [1, 1, 128], strides = [1, 1, 1]} : vector<3x3x128xf32> to vector<1x1x128xf32>
    %32 = vector.broadcast %31 : vector<1x1x128xf32> to vector<16x16x128xf32>
    %33 = arith.mulf %30, %32 : vector<16x16x128xf32>
    %34 = arith.addf %29, %33 : vector<16x16x128xf32>
    %35 = vector.extract_strided_slice %20 {offsets = [0, 0, 0], sizes = [16, 16, 128], strides = [1, 1, 1]} : vector<18x16x128xf32> to vector<16x16x128xf32>
    %36 = vector.extract_strided_slice %21 {offsets = [0, 2, 0], sizes = [1, 1, 128], strides = [1, 1, 1]} : vector<3x3x128xf32> to vector<1x1x128xf32>
    %37 = vector.broadcast %36 : vector<1x1x128xf32> to vector<16x16x128xf32>
    %38 = arith.mulf %35, %37 : vector<16x16x128xf32>
    %39 = arith.addf %34, %38 : vector<16x16x128xf32>
    %40 = vector.extract_strided_slice %18 {offsets = [1, 0, 0], sizes = [16, 16, 128], strides = [1, 1, 1]} : vector<18x16x128xf32> to vector<16x16x128xf32>
    %41 = vector.extract_strided_slice %21 {offsets = [1, 0, 0], sizes = [1, 1, 128], strides = [1, 1, 1]} : vector<3x3x128xf32> to vector<1x1x128xf32>
    %42 = vector.broadcast %41 : vector<1x1x128xf32> to vector<16x16x128xf32>
    %43 = arith.mulf %40, %42 : vector<16x16x128xf32>
    %44 = arith.addf %39, %43 : vector<16x16x128xf32>
    %45 = vector.extract_strided_slice %15 {offsets = [1, 0, 0], sizes = [16, 16, 128], strides = [1, 1, 1]} : vector<18x16x128xf32> to vector<16x16x128xf32>
    %46 = vector.extract_strided_slice %21 {offsets = [1, 1, 0], sizes = [1, 1, 128], strides = [1, 1, 1]} : vector<3x3x128xf32> to vector<1x1x128xf32>
    %47 = vector.broadcast %46 : vector<1x1x128xf32> to vector<16x16x128xf32>
    %48 = arith.mulf %45, %47 : vector<16x16x128xf32>
    %49 = arith.addf %44, %48 : vector<16x16x128xf32>
    %50 = vector.extract_strided_slice %20 {offsets = [1, 0, 0], sizes = [16, 16, 128], strides = [1, 1, 1]} : vector<18x16x128xf32> to vector<16x16x128xf32>
    %51 = vector.extract_strided_slice %21 {offsets = [1, 2, 0], sizes = [1, 1, 128], strides = [1, 1, 1]} : vector<3x3x128xf32> to vector<1x1x128xf32>
    %52 = vector.broadcast %51 : vector<1x1x128xf32> to vector<16x16x128xf32>
    %53 = arith.mulf %50, %52 : vector<16x16x128xf32>
    %54 = arith.addf %49, %53 : vector<16x16x128xf32>
    %55 = vector.extract_strided_slice %18 {offsets = [2, 0, 0], sizes = [16, 16, 128], strides = [1, 1, 1]} : vector<18x16x128xf32> to vector<16x16x128xf32>
    %56 = vector.extract_strided_slice %21 {offsets = [2, 0, 0], sizes = [1, 1, 128], strides = [1, 1, 1]} : vector<3x3x128xf32> to vector<1x1x128xf32>
    %57 = vector.broadcast %56 : vector<1x1x128xf32> to vector<16x16x128xf32>
    %58 = arith.mulf %55, %57 : vector<16x16x128xf32>
    %59 = arith.addf %54, %58 : vector<16x16x128xf32>
    %60 = vector.extract_strided_slice %15 {offsets = [2, 0, 0], sizes = [16, 16, 128], strides = [1, 1, 1]} : vector<18x16x128xf32> to vector<16x16x128xf32>
    %61 = vector.extract_strided_slice %21 {offsets = [2, 1, 0], sizes = [1, 1, 128], strides = [1, 1, 1]} : vector<3x3x128xf32> to vector<1x1x128xf32>
    %62 = vector.broadcast %61 : vector<1x1x128xf32> to vector<16x16x128xf32>
    %63 = arith.mulf %60, %62 : vector<16x16x128xf32>
    %64 = arith.addf %59, %63 : vector<16x16x128xf32>
    %65 = vector.extract_strided_slice %20 {offsets = [2, 0, 0], sizes = [16, 16, 128], strides = [1, 1, 1]} : vector<18x16x128xf32> to vector<16x16x128xf32>
    %66 = vector.extract_strided_slice %21 {offsets = [2, 2, 0], sizes = [1, 1, 128], strides = [1, 1, 1]} : vector<3x3x128xf32> to vector<1x1x128xf32>
    %67 = vector.broadcast %66 : vector<1x1x128xf32> to vector<16x16x128xf32>
    %68 = arith.mulf %65, %67 : vector<16x16x128xf32>
    %69 = arith.addf %64, %68 : vector<16x16x128xf32>
    %c0_21 = arith.constant 0 : index
    %c0_22 = arith.constant 0 : index
    %c0_23 = arith.constant 0 : index
    %c0_24 = arith.constant 0 : index
    %70 = vector.load %arg8[%c0_21, %c0_22, %c0_23, %c0_24] : memref<1x16x16x128xf32, #tpu.memory_space<vmem>>, vector<1x16x16x128xf32>
    %71 = vector.shape_cast %70 : vector<1x16x16x128xf32> to vector<16x16x128xf32>
    %72 = vector.shape_cast %69 : vector<16x16x128xf32> to vector<1x16x16x128xf32>
    tpu.vector_store %arg8[%c0_21, %c0_22, %c0_23, %c0_24], %72 {strides = array<i32>} : memref<1x16x16x128xf32, #tpu.memory_space<vmem>>, vector<1x16x16x128xf32>,
    return
  }
  func.func @transform_0(%arg0: i32, %arg1: i32, %arg2: i32) -> (i32, i32, i32, i32) {
    %c0_i32 = arith.constant 0 : i32
    %c0_i32_0 = arith.constant 0 : i32
    return %arg0, %arg1, %c0_i32, %arg2 : i32, i32, i32, i32
  }
  func.func @transform_1(%arg0: i32, %arg1: i32, %arg2: i32) -> (i32, i32, i32, i32) {
    %c16_i32 = arith.constant 16 : i32
    %0 = arith.muli %arg1, %c16_i32 : i32
    %c1_i32 = arith.constant 1 : i32
    %1 = arith.subi %0, %c1_i32 : i32
    %c0_i32 = arith.constant 0 : i32
    %2 = arith.maxsi %1, %c0_i32 : i32
    %c0_i32_0 = arith.constant 0 : i32
    %c0_i32_1 = arith.constant 0 : i32
    return %arg0, %2, %c0_i32_0, %arg2 : i32, i32, i32, i32
  }
  func.func @transform_2(%arg0: i32, %arg1: i32, %arg2: i32) -> (i32, i32, i32, i32) {
    %c16_i32 = arith.constant 16 : i32
    %0 = arith.muli %arg1, %c16_i32 : i32
    %c16_i32_0 = arith.constant 16 : i32
    %1 = arith.addi %0, %c16_i32_0 : i32
    %c15_i32 = arith.constant 15 : i32
    %2 = arith.minsi %1, %c15_i32 : i32
    %c0_i32 = arith.constant 0 : i32
    %c0_i32_1 = arith.constant 0 : i32
    return %arg0, %2, %c0_i32, %arg2 : i32, i32, i32, i32
  }
  func.func @transform_3(%arg0: i32, %arg1: i32, %arg2: i32) -> (i32, i32, i32) {
    %c0_i32 = arith.constant 0 : i32
    %c0_i32_0 = arith.constant 0 : i32
    %c0_i32_1 = arith.constant 0 : i32
    return %c0_i32, %c0_i32_0, %arg2 : i32, i32, i32
  }
  func.func @transform_4(%arg0: i32, %arg1: i32, %arg2: i32) -> (i32, i32, i32) {
    %c0_i32 = arith.constant 0 : i32
    %c0_i32_0 = arith.constant 0 : i32
    %c0_i32_1 = arith.constant 0 : i32
    return %c0_i32, %c0_i32_0, %arg2 : i32, i32, i32
  }
  func.func @transform_5(%arg0: i32, %arg1: i32, %arg2: i32) -> (i32, i32, i32, i32) {
    %c0_i32 = arith.constant 0 : i32
    %c0_i32_0 = arith.constant 0 : i32
    return %arg0, %arg1, %c0_i32, %arg2 : i32, i32, i32, i32
  }
}

</mosaic_0001>

<bundles_post_ra>
// kernel: tpu_custom_call.1
= control target key start
LH: loop header
LB: loop body
LE: loop exit
PB: predicated region body
PF: predicated region fallthrough
CT: control target
= control target key end

     0   :  { %s3135_s0 = inlined_call_operand.hbm [shape: f32[2,16,16,128], index: 0, kind: input, shape index: {}]   ;;  %s3136_s1 = inlined_call_operand.hbm [shape: f32[2,16,16,128], index: 1, kind: input, shape index: {}]   ;;  %s3137_s2 = inlined_call_operand.hbm [shape: f32[2,16,16,128], index: 2, kind: input, shape index: {}]   ;;  %s3138_s3 = inlined_call_operand.hbm [shape: f32[3,3,128], index: 3, kind: input, shape index: {}]   ;;  %s3139_s4 = inlined_call_operand.vmem [shape: f32[1,1,128], index: 4, kind: input, shape index: {}]   ;;  %s3140_s5 = inlined_call_operand.hbm [shape: f32[2,16,16,128], index: 5, kind: output, shape index: {}]  }
   0x1   :  { %3162 = sst [smem:[#allocation23_spill]] %s3136_s1 }
   0x2   :  { %3163 = sst [smem:[#allocation24_spill]] %s3140_s5 }
   0x3   :  { %10 = vsyncpa [#allocation4], 0 }
   0x4   :  { %12 = vsyncpa [#allocation4 + $0x1], 0 }
   0x5   :  { %13 = vsyncpa [#allocation7], 0 }
   0x6   :  { %15 = vsyncpa [#allocation7 + $0x1], 0 }
   0x7   :  { %16 = vsyncpa [#allocation10], 0 }
   0x8   :  { %17 = vsyncpa [#allocation5], 0 }
   0x9   :  { %19 = vsyncpa [#allocation5 + $0x1], 0  ;;  %s2034_s18 = smov 0   ;;  %s2036_s19 = smov 0  }
   0xa   :  { %s2038_s20 = smov 0   ;;  %s2040_s21 = smov 0  }
   0xb   :  { %s2042_s22 = smov 0   ;;  %s2044_s23 = smov 0  }
   0xc LB: > { %3164 = sst [smem:[#allocation16_spill]] %s1970_s18  ;;  %s44_s24 = sadd.s32 1, %s1986_s22  ;;  %s1990_s23 = sphi %s2044_s23, %s25_s23   ;;  %s1986_s22 = sphi %s2042_s22, %s3199_s22   ;;  %s1982_s21 = sphi %s2040_s21, %s3198_s21   ;;  %s1978_s20 = sphi %s2038_s20, %s3197_s20   ;;  %s1974_s19 = sphi %s2036_s19, %s3201_s19   ;;  %s1970_s18 = sphi %s2034_s18, %s3200_s18  }
   0xd   : > { %3165 = sst [smem:[#allocation17_spill]] %s1978_s20  ;;  %s55_s25 = sadd.s32 1, %s1978_s20 }
   0xe   : > { %3166 = sst [smem:[#allocation18_spill]] %s1986_s22  ;;  %p46_p0 = scmp.ge.s32.totalorder %s44_s24, 2 }
   0xf   : > { %3167 = sst [smem:[#allocation19_spill]] %s1990_s23  ;;  %p3141_p1 = scmp.ne.s32.totalorder %s1978_s20, %s1974_s19 }
  0x10   : > { %p63_p2 = scmp.eq.s32.totalorder %s1990_s23, 0  ;;  %s3203_s24 = smov (%p46_p0, %s44_s24), 0 }
  0x11   : > { %3168 = sst [smem:[#allocation20_spill]] %s3203_s24  ;;  %p1722_p5 = scmp.lt.s32.totalorder %s1990_s23, 2 }
  0x12   : > { %p64_p4 = por %p63_p2, %p3141_p1  ;;  %s48_s26 = ssub.s32 %s1986_s22, %s3203_s24 }
  0x13   : > { %s2079_s27 = sand.u32 1, %s1978_s20   ;;  %p53_p6 = scmp.eq.s32.totalorder %s48_s26, 0 }
  0x14   : > { %s2082_s28 = sshll.u32 %s1986_s22, 12  ;;  %p2084_p7 = pnand %p1722_p5, %p64_p4 }
  0x15   : > { %s2089_s30 = scalar_select %p53_p6, %s1978_s20, %s55_s25  }
  0x16   : > { %s3169_s29 = scalar_select %p2084_p7, 1, 0 }
  0x17   : > { %3170 = sst [smem:[#allocation21_spill]] %s2089_s30  ;;  %s296_s6 = sand.u32 1, %s1990_s23  }
  0x18   : > { %s1667_s7 = sshll.u32 %s2079_s27, 4  ;;  %s3171_s1 = sld [smem:[#allocation23_spill]] }
  0x19   : > { %s300_s11 = scalar_lea.vmem [#allocation6], %s1667_s7  ;;  %s2103_s13 = scalar_lea.sflag [#allocation7], %s296_s6 }
  0x1a   : > { %s314_s12 = sshll.u32 %s300_s11, 4  ;;  %p2109_p9 = pneg %p2084_p7  ;;  %s2101_s12 = int_to_ptr.vmem [resolvable:$true] %s314_s12 }
  0x1c   : > { %s3172_s15 = scalar_select %p2109_p9, 1, 0 }
  0x1e   : > { %s2097_s10 = scalar_lea.hbm %s3171_s1, %s2082_s28  ;;  %s1787_s25 = scalar_lea.hbm %s3171_s1, 8192 }
  0x1f   : > { %s1782_s14 = scalar_lea.hbm %s2097_s10, 256  ;;  %p1788_p12 = scmp.lt.u32.totalorder %s2097_s10, %s3171_s1 }
  0x20   : > { %p1783_p8 = scmp.ne.s32.totalorder %s2097_s10, %s1782_s14  ;;  %p1789_p13 = scmp.lt.u32.totalorder %s1787_s25, %s1782_s14 }
  0x21   : > { %p1791_p2 = scmp.lt.u32.totalorder %s1782_s14, %s2097_s10 }
  0x22   : > { %p1785_p10 = pnand %p2109_p9, %p1783_p8  ;;  %p1790_p0 = por %p1789_p13, %p1788_p12 }
  0x24   : > { %p1786_p11 = pneg %p1785_p10  ;;  %p1792_p4 = por %p1791_p2, %p1790_p0 }
  0x26   : > { %p1793_p5 = pnand %p1792_p4, %p1786_p11 }
  0x28   : > { %1796 = shalt.err (!%p1793_p5)
}
  0x29   : > { %s1797_s6 = scalar_lea.vmem %s2101_s12, 256  ;;  %s1992_s9 = smov [#allocation6]  }
  0x2a   : > { %p1798_p6 = scmp.ne.s32.totalorder %s2101_s12, %s1797_s6  ;;  %s1802_s11 = sshll.u32 %s1992_s9, 4  ;;  %s1803_s11 = int_to_ptr.vmem [resolvable:$false] %s1802_s11 }
  0x2b   : > { %s1804_s16 = scalar_lea.vmem %s1803_s11, 512  ;;  %p1805_p3 = scmp.lt.s32.totalorder %s2101_s12, %s1803_s11 }
  0x2c   : > { %p1800_p8 = pnand %p1798_p6, %p2109_p9  ;;  %p1806_p1 = scmp.lt.s32.totalorder %s1804_s16, %s1797_s6 }
  0x2e   : > { %p1801_p10 = pneg %p1800_p8  ;;  %p1807_p12 = por %p1806_p1, %p1805_p3 }
  0x30   : > { %p1808_p13 = pnand %p1807_p12, %p1801_p10 }
  0x32   : > { %1811 = shalt.err (!%p1808_p13)
}
  0x33   : > { %s3142_s14 = smov 128   ;;  %s3144_s17 = smov 8  }
  0x34   : > { %1713 = dma.hbm_to_vmem [thread:$0]  (!%p2084_p7), %s2097_s10, 256, %s2101_s12, %s2103_s13, %s3142_s14, %s3142_s14, %s3144_s17  }
  0x35   : > { %s328_s25 = scalar_lea.vmem [#allocation8], %s1667_s7  ;;  %s2141_s8 = sadd.s32 4294967295, %s1990_s23  }
  0x36   : > { %s342_s26 = sshll.u32 %s328_s25, 4  ;;  %s1659_s6 = sadd.s32 4294967294, %s1990_s23   ;;  %s2138_s26 = int_to_ptr.vmem [resolvable:$true] %s342_s26 }
  0x37   : > { %p68_p1 = scmp.ne.s32.totalorder %s1974_s19, %s1970_s18  ;;  %p3153_p3 = scmp.eq.s32.totalorder %s2141_s8, 0 }
  0x38   : > { %p224_p11 = scmp.eq.s32.totalorder %s2141_s8, 1  ;;  %p230_p0 = scmp.eq.s32.totalorder %s1659_s6, 1 }
  0x39   : > { %p2150_p2 = por %p3153_p3, %p68_p1  ;;  %p1660_p4 = scmp.ge.s32.totalorder %s1990_s23, 1 }
  0x3a   : > { %p3174_p5 = scmp.ne.s32.totalorder %s1978_s20, %s1974_s19  ;;  %p2162_p8 = por %p230_p0, %p68_p1 }
  0x3b   : > { %s3173_s7 = scalar_select %p2150_p2, 1, 0 }
  0x3c   : > { %p2158_p6 = por %p224_p11, %p3174_p5  ;;  %p237_p10 = scmp.lt.s32.totalorder %s1990_s23, 3 }
  0x3d   : > { %s3176_s12 = scalar_select %p2162_p8, 1, 0 }
  0x3e   : > { %s3175_s10 = scalar_select %p2158_p6, 1, 0 }
  0x3f   : > { %3177 = sst [smem:[#allocation22_spill]] %s3176_s12  ;;  %p2167_p12 = pnand %p1660_p4, %p237_p10 }
  0x40   : > { %s1995_s11 = smov [#allocation9]   ;;  %s1664_s25 = sshll.u32 %s2079_s27, 8 }
  0x41   : > { %s3178_s9 = scalar_select %p2167_p12, 1, 0 }
  0x42   : > { %s251_s16 = sshll.u32 %s1995_s11, 4  ;;  %p1703_p13 = pneg %p2167_p12  ;;  %s2171_s16 = int_to_ptr.vmem [resolvable:$true] %s251_s16 }
  0x43   : > { %s2180_s17 = scalar_lea.hbm %s3135_s0, %s2082_s28  ;;  %s275_s24 = scalar_lea.vmem [#allocation3], %s1664_s25 }
  0x44   : > { %p2184_p1 = pnand %p1703_p13, %p3153_p3  ;;  %s286_s22 = sshll.u32 %s275_s24, 4  ;;  %s2189_s22 = int_to_ptr.vmem [resolvable:$true] %s286_s22 }
  0x45   : > { %s1812_s23 = scalar_lea.hbm %s3138_s3, 192 }
  0x46   : > { %p1813_p11 = scmp.ne.s32.totalorder %s3138_s3, %s1812_s23  ;;  %p1814_p0 = pneg %p2184_p1 }
  0x47   : > { %p1819_p10 = scmp.lt.u32.totalorder %s1812_s23, %s3138_s3 }
  0x48   : > { %p1815_p4 = pnand %p1814_p0, %p1813_p11 }
  0x4a   : > { %p1816_p5 = pneg %p1815_p4 }
  0x4c   : > { %p1821_p13 = pnand %p1819_p10, %p1816_p5 }
  0x4e   : > { %1824 = shalt.err (!%p1821_p13)
}
  0x4f   : > { %s1825_s24 = scalar_lea.vmem %s2171_s16, 192  ;;  %p1833_p2 = scmp.lt.s32.totalorder %s2171_s16, %s2171_s16 }
  0x50   : > { %p1826_p3 = scmp.ne.s32.totalorder %s2171_s16, %s1825_s24  ;;  %p1834_p12 = scmp.lt.s32.totalorder %s1825_s24, %s1825_s24 }
  0x52   : > { %p1828_p8 = pnand %p1826_p3, %p1814_p0  ;;  %p1835_p7 = por %p1834_p12, %p1833_p2 }
  0x54   : > { %p1829_p6 = pneg %p1828_p8 }
  0x56   : > { %p1836_p9 = pnand %p1835_p7, %p1829_p6 }
  0x58   : > { %1839 = shalt.err (!%p1836_p9)
}
  0x59   : > { %s1996_s18 = smov 64   ;;  %s1997_s20 = smov 4  }
  0x5a   : > { %1706 = dma.hbm_to_vmem [thread:$0]  (!%p2184_p1), %s3138_s3, 192, %s2171_s16, [#allocation10], %s1996_s18, %s1996_s18, %s1997_s20  }
  0x5b   : > { %s272_s25 = scalar_lea.sflag [#allocation4], %s2079_s27  ;;  %s1840_s11 = scalar_lea.hbm %s2180_s17, 4096 }
  0x5c   : > { %p1841_p3 = scmp.ne.s32.totalorder %s2180_s17, %s1840_s11  ;;  %p3180_p7 = scmp.ne.s32.totalorder %s3172_s15, 0 }
  0x5d   : > { %s1845_s24 = scalar_lea.hbm %s3135_s0, 8192  ;;  %p1846_p6 = scmp.lt.u32.totalorder %s2180_s17, %s3135_s0 }
  0x5e   : > { %p1843_p9 = pnand %p1841_p3, %p3180_p7  ;;  %p1847_p8 = scmp.lt.u32.totalorder %s1845_s24, %s1840_s11 }
  0x5f   : > { %p1849_p11 = scmp.lt.u32.totalorder %s1840_s11, %s2180_s17 }
  0x60   : > { %p1844_p2 = pneg %p1843_p9  ;;  %p1848_p12 = por %p1847_p8, %p1846_p6 }
  0x62   : > { %p1850_p0 = por %p1849_p11, %p1848_p12 }
  0x64   : > { %p1851_p4 = pnand %p1850_p0, %p1844_p2 }
  0x66   : > { %1854 = shalt.err (!%p1851_p4)
}
  0x67   : > { %s1855_s1 = scalar_lea.vmem %s2189_s22, 4096  ;;  %s1998_s16 = smov [#allocation3]  }
  0x68   : > { %p1856_p1 = scmp.ne.s32.totalorder %s2189_s22, %s1855_s1  ;;  %s1860_s18 = sshll.u32 %s1998_s16, 4  ;;  %s1861_s18 = int_to_ptr.vmem [resolvable:$false] %s1860_s18 }
  0x69   : > { %s1862_s5 = scalar_lea.vmem %s1861_s18, 8192  ;;  %p1863_p13 = scmp.lt.s32.totalorder %s2189_s22, %s1861_s18 }
  0x6a   : > { %p1858_p5 = pnand %p1856_p1, %p3180_p7  ;;  %p1864_p3 = scmp.lt.s32.totalorder %s1862_s5, %s1855_s1 }
  0x6c   : > { %p1859_p10 = pneg %p1858_p5  ;;  %p1865_p9 = por %p1864_p3, %p1863_p13 }
  0x6e   : > { %p1866_p6 = pnand %p1865_p9, %p1859_p10 }
  0x70   : > { %1869 = shalt.err (!%p1866_p6)
}
  0x71   : > { %p3181_p2 = scmp.ne.s32.totalorder %s3169_s29, 0  ;;  %s3182_s30 = smov 8  }
  0x72   : > { %s3183_s20 = smov 128   ;;  %s3184_s23 = sadd.s32 3840, %s2082_s28 }
  0x73   : > { %1710 = dma.hbm_to_vmem [thread:$0]  (!%p3181_p2), %s2180_s17, 4096, %s2189_s22, %s272_s25, %s3183_s20, %s3183_s20, %s3182_s30  }
  0x74   : > { %s2244_s14 = scalar_lea.hbm %s3137_s2, %s3184_s23  ;;  %s1875_s1 = scalar_lea.hbm %s3137_s2, 8192 }
  0x75   : > { %s1870_s6 = scalar_lea.hbm %s2244_s14, 256  ;;  %p1876_p0 = scmp.lt.u32.totalorder %s2244_s14, %s3137_s2 }
  0x76   : > { %p1871_p8 = scmp.ne.s32.totalorder %s2244_s14, %s1870_s6  ;;  %p1877_p4 = scmp.lt.u32.totalorder %s1875_s1, %s1870_s6 }
  0x77   : > { %p1879_p5 = scmp.lt.u32.totalorder %s1870_s6, %s2244_s14 }
  0x78   : > { %p1873_p12 = pnand %p1871_p8, %p3180_p7  ;;  %p1878_p1 = por %p1877_p4, %p1876_p0 }
  0x7a   : > { %p1874_p11 = pneg %p1873_p12  ;;  %p1880_p10 = por %p1879_p5, %p1878_p1 }
  0x7c   : > { %p1881_p13 = pnand %p1880_p10, %p1874_p11 }
  0x7e   : > { %1884 = shalt.err (!%p1881_p13)
}
  0x7f   : > { %s1885_s17 = scalar_lea.vmem %s2138_s26, 256  ;;  %s1999_s25 = smov [#allocation8]  }
  0x80   : > { %p1886_p3 = scmp.ne.s32.totalorder %s2138_s26, %s1885_s17  ;;  %s1890_s16 = sshll.u32 %s1999_s25, 4  ;;  %s1891_s16 = int_to_ptr.vmem [resolvable:$false] %s1890_s16 }
  0x81   : > { %s1892_s18 = scalar_lea.vmem %s1891_s16, 512  ;;  %p1893_p8 = scmp.lt.s32.totalorder %s2138_s26, %s1891_s16 }
  0x82   : > { %p1888_p9 = pnand %p1886_p3, %p3180_p7  ;;  %p1894_p12 = scmp.lt.s32.totalorder %s1892_s18, %s1885_s17 }
  0x84   : > { %p1889_p6 = pneg %p1888_p9  ;;  %p1895_p0 = por %p1894_p12, %p1893_p8 }
  0x86   : > { %p1896_p4 = pnand %p1895_p0, %p1889_p6 }
  0x88   : > { %1899 = shalt.err (!%p1896_p4)
}
  0x89   : > { %1716 = dma.hbm_to_vmem [thread:$0]  (!%p3181_p2), %s2244_s14, 256, %s2138_s26, %s2103_s13, %s3183_s20, %s3183_s20, %s3182_s30  }
  0x8a   : > { %p3185_p7 = scmp.ne.s32.totalorder %s3178_s9, 0 }
  0x8b   : > { %s2274_s15 = sand.u32 (!%p3185_p7), 1, %s1974_s19   ;;  %p3186_p11 = scmp.ne.s32.totalorder (!%p3185_p7), %s3173_s7, 0 }
  0x8c   : > { %354 = sbr.rel (%p3185_p7) target bundleno = 357 (0x165), region = 40  ;;  %s1674_s5 = sshll.u32 (!%p3185_p7), %s2274_s15, 8 }
  0x8d   : > { %s357_s23 = scalar_lea.sflag (!%p3185_p7), [#allocation4], %s2274_s15  ;;  %s2280_s29 = scalar_lea.vmem (!%p3185_p7), [#allocation3], %s1674_s5 }
  0x93   : > { %1953 = dma.done.wait (%p3186_p11), %s357_s23, 4096  }
  0x94   : > { %1955 = vsyncadd (%p3186_p11), %s357_s23, 4294963200  ;;  %s365_s13 = sand.u32 1, %s2141_s8  }
  0x95   : > { %s366_s26 = scalar_lea.sflag [#allocation7], %s365_s13 }
  0x96   : > { %1957 = dma.done.wait (%p3186_p11), %s366_s26, 512  }
  0x97   : > { %1959 = vsyncadd (%p3186_p11), %s366_s26, 4294966784  ;;  %p3187_p2 = scmp.eq.s32.totalorder %s2141_s8, 0 }
  0x99   : > { %1961 = dma.done.wait (%p3187_p2), [#allocation10], 192   ;;  %p3188_p1 = pmov %p3187_p2 }
  0x9a   : > { %v829_v0 = vlaneseq  ;;  %v2000_v2 = vmov 0.0   ;;  %vm601_vm0 = vcmask 1040384   ;;  %vm710_vm1 = vcmask 1046528   ;;  %v2300_v6 = vld [vmem:[%s2280_s29] sm:$0xff]  ;;  %v2303_v7 = vld [vmem:[%s2280_s29 + $0x8] sm:$0xff]  ;;  %v2306_v8 = vld [vmem:[%s2280_s29 + $0x10] sm:$0xff] }
  0x9b   : > { %1963 = vsyncadd (%p3188_p1), [#allocation10], 4294967104  ;;  %v2295_v3 = vrot.slane %v2000_v2, 7  ;;  %v2297_v4 = vrot.slane %v2000_v2, 1  ;;  %v2313_v12 = vld [vmem:[%s2280_s29 + $0x18] sm:$0xff]  ;;  %v605_v13 = vrot.slane %v2300_v6, 7 }
  0x9c   : > { %v830_v1 = vshrl.u32 %v829_v0, 7  ;;  %v608_v14 = vrot.slane %v2306_v8, 7  ;;  %v714_v15 = vrot.slane %v2300_v6, 1  ;;  %v715_v16 = vrot.slane %v2303_v7, 1  ;;  %v819_v19 = vld [vmem:[#allocation9] sm:$0x7] }
  0x9d   : > { %v2310_v9 = vsel %vm601_vm0, 0.0, %v2295_v3  ;;  %v717_v17 = vrot.slane %v2306_v8, 1  ;;  %v718_v18 = vrot.slane %v2313_v12, 1  ;;  %v820_v20 = vld [vmem:[#allocation9 + $0x4] sm:$0x7]  ;;  %v693_v23 = vsel %vm601_vm0, 0.0, %v605_v13 }
  0x9e   : > { %v831_v5 = vsub.s32 0, %v830_v1  ;;  %v899_v10 = vsub.s32 1, %v830_v1  ;;  %v967_v11 = vsub.s32 2, %v830_v1  ;;  %v694_v21 = vsel %vm601_vm0, 0.0, %v608_v14  ;;  %v2329_v25 = vld [vmem:[%s3139_s4] ss:$0 sm:$0xff] }
  0x9f   : > { %v716_v24 = vsel %vm710_vm1, %v714_v15, %v715_v16  ;;  %v719_v28 = vsel %vm710_vm1, %v717_v17, %v718_v18  ;;  %v821_v29 = vld [vmem:[#allocation9 + $0x8] sm:$0x7]  ;;  %v2348_v36 = vsel %vm710_vm1, %v2297_v4, 0.0  ;;  %v606_v52 = vrot.slane %v2303_v7, 7  ;;  %v2399_v17 = vld [vmem:[%s2280_s29 + $0x20] sm:$0xff]  ;;  %s2442_s9 = scalar_lea.vmem [#allocation11], %s1674_s5 }
  0xa0   : > { %v2322_v22 = vrot.slane %v819_v19, %v831_v5  ;;  %v2331_v26 = vrot.slane %v819_v19, %v899_v10  ;;  %v2333_v27 = vrot.slane %v819_v19, %v967_v11  ;;  %v2339_v32 = vrot.slane %v820_v20, %v831_v5  ;;  %s1689_s12 = sshll.u32 %s1982_s21, 12  ;;  %s1491_s11 = sshll.u32 %s2442_s9, 4  ;;  %s3084_s11 = int_to_ptr.vmem [resolvable:$true] %s1491_s11 }
  0xa1   : > { %v2344_v35 = vrot.slane %v820_v20, %v899_v10  ;;  %v2359_v43 = vrot.slane %v820_v20, %v967_v11  ;;  %v2361_v44 = vrot.slane %v821_v29, %v831_v5  ;;  %v2364_v48 = vrot.slane %v821_v29, %v899_v10  ;;  %s3189_s27 = sld [smem:[#allocation24_spill]]  ;;  %s1474_s1 = scalar_lea.sflag [#allocation5], %s2274_s15 }
  0xa2   : > { %v833_v30 = vmul.f32 %v2322_v22, %v2310_v9  ;;  %v837_v31 = vmul.f32 %v2322_v22, %v694_v21  ;;  %v901_v33 = vmul.f32 0.0, %v2331_v26  ;;  %v905_v34 = vmul.f32 %v2331_v26, %v2306_v8  ;;  %s1900_s22 = scalar_lea.vmem %s3084_s11, 4096  ;;  %p3190_p10 = scmp.ne.s32.totalorder %s3175_s10, 0 }
  0xa3   : > { %v835_v37 = vmul.f32 %v2322_v22, %v693_v23  ;;  %v969_v40 = vmul.f32 %v2333_v27, %v2297_v4  ;;  %v2356_v41 = vmul.f32 %v2333_v27, %v716_v24  ;;  %v973_v42 = vmul.f32 %v2333_v27, %v719_v28  ;;  %p1901_p5 = scmp.ne.s32.totalorder %s3084_s11, %s1900_s22  ;;  %s2001_s21 = smov [#allocation11]  }
  0xa4   : > { %v865_v38 = vadd.f32 %v2329_v25, %v833_v30  ;;  %v869_v39 = vadd.f32 %v2329_v25, %v837_v31  ;;  %v1037_v47 = vmul.f32 %v2339_v32, %v693_v23  ;;  %v2367_v49 = vmul.f32 %v2339_v32, %v694_v21  ;;  %v2415_v31 = vld [vmem:[%s2280_s29 + $0x28] sm:$0xff]  ;;  %s1904_s28 = sshll.u32 %s2001_s21, 4  ;;  %s1905_s28 = int_to_ptr.vmem [resolvable:$false] %s1904_s28 }
  0xa5   : > { %v1105_v50 = vmul.f32 %v2344_v35, %v2300_v6  ;;  %v2371_v51 = vrot.slane %v821_v29, %v967_v11  ;;  %v1173_v54 = vmul.f32 %v2359_v43, %v716_v24  ;;  %v2376_v55 = vmul.f32 %v2359_v43, %v719_v28  ;;  %p1902_p13 = pnand %p1901_p5, %p3190_p10  ;;  %s1906_s17 = scalar_lea.vmem %s1905_s28, 8192 }
  0xa6   : > { %v933_v45 = vadd.f32 %v901_v33, %v865_v38  ;;  %v937_v46 = vadd.f32 %v905_v34, %v869_v39  ;;  %v1241_v56 = vmul.f32 %v2361_v44, %v694_v21  ;;  %v1309_v58 = vmul.f32 %v2364_v48, %v2306_v8  ;;  %p1907_p9 = scmp.lt.s32.totalorder %s3084_s11, %s1905_s28  ;;  %p1908_p6 = scmp.lt.s32.totalorder %s1906_s17, %s1900_s22 }
  0xa7   : > { %v607_v59 = vsel %vm601_vm0, %v605_v13, %v606_v52  ;;  %v609_v60 = vrot.slane %v2313_v12, 7  ;;  %v802_v62 = vsel %vm710_vm1, %v715_v16, 0.0  ;;  %v803_v63 = vsel %vm710_vm1, %v718_v18, 0.0  ;;  %s3082_s24 = scalar_lea.hbm %s3189_s27, %s1689_s12  ;;  %p1903_p3 = pneg %p1902_p13 }
  0xa8   : > { %v1001_v53 = vadd.f32 %v969_v40, %v933_v45  ;;  %v2379_v57 = vadd.f32 %v973_v42, %v937_v46  ;;  %v834_v0 = vmul.f32 %v2322_v22, %v2295_v3  ;;  %v1377_v1 = vmul.f32 %v2371_v51, %v719_v28  ;;  %p1909_p8 = por %p1908_p6, %p1907_p9 }
  0xa9   : > { %v610_v2 = vsel %vm601_vm0, %v608_v14, %v609_v60  ;;  %v836_v5 = vmul.f32 %v2322_v22, %v607_v59  ;;  %v906_v10 = vmul.f32 %v2331_v26, %v2313_v12  ;;  %v970_v16 = vmul.f32 %v2333_v27, %v2348_v36 }
  0xaa   : > { %v1069_v61 = vadd.f32 %v1037_v47, %v1001_v53  ;;  %v838_v13 = vmul.f32 %v2322_v22, %v610_v2  ;;  %v866_v15 = vadd.f32 %v2329_v25, %v834_v0  ;;  %v972_v18 = vmul.f32 %v2333_v27, %v802_v62  ;;  %p1910_p12 = pnand %p1909_p8, %p1903_p3 }
  0xab   : > { %v974_v14 = vmul.f32 %v2333_v27, %v803_v63  ;;  %v1038_v19 = vmul.f32 %v2339_v32, %v607_v59  ;;  %v2405_v20 = vmul.f32 %v2339_v32, %v610_v2  ;;  %v1106_v28 = vmul.f32 %v2344_v35, %v2303_v7 }
  0xac   : > { %v1137_v11 = vadd.f32 %v1105_v50, %v1069_v61  ;;  %v870_v23 = vadd.f32 %v2329_v25, %v838_v13  ;;  %v934_v24 = vadd.f32 %v901_v33, %v866_v15  ;;  %v1174_v29 = vmul.f32 %v2359_v43, %v802_v62 }
  0xad   : > { %v2412_v30 = vmul.f32 %v2359_v43, %v803_v63  ;;  %v611_v34 = vrot.slane %v2399_v17, 7  ;;  %v720_v38 = vrot.slane %v2399_v17, 1  ;;  %v721_v45 = vrot.slane %v2415_v31, 1 }
  0xae   : > { %v1205_v21 = vadd.f32 %v1173_v54, %v1137_v11  ;;  %v938_v40 = vadd.f32 %v906_v10, %v870_v23  ;;  %v1002_v42 = vadd.f32 %v970_v16, %v934_v24  ;;  %v1242_v33 = vmul.f32 %v2361_v44, %v610_v2 }
  0xaf   : > { %v695_v46 = vsel %vm601_vm0, 0.0, %v611_v34  ;;  %v867_v47 = vadd.f32 %v2329_v25, %v835_v37  ;;  %v903_v50 = vmul.f32 %v2331_v26, %v2300_v6  ;;  %v1310_v54 = vmul.f32 %v2364_v48, %v2313_v12 }
  0xb0   : > { %v1273_v39 = vadd.f32 %v1241_v56, %v1205_v21  ;;  %v1070_v53 = vadd.f32 %v1038_v19, %v1002_v42  ;;  %v722_v56 = vsel %vm710_vm1, %v720_v38, %v721_v45  ;;  %v1378_v59 = vmul.f32 %v2371_v51, %v803_v63 }
  0xb1   : > { %v839_v60 = vmul.f32 %v2322_v22, %v695_v46  ;;  %v907_v61 = vmul.f32 %v2331_v26, %v2399_v17  ;;  %v935_v62 = vadd.f32 %v903_v50, %v867_v47  ;;  %v2432_v0 = vadd.f32 %v974_v14, %v938_v40  ;;  %v2460_v40 = vld [vmem:[%s2280_s29 + $0x30] sm:$0xff] }
  0xb2   : > { %v1341_v52 = vadd.f32 %v1309_v58, %v1273_v39  ;;  %v1138_v6 = vadd.f32 %v1106_v28, %v1070_v53  ;;  %v975_v58 = vmul.f32 %v2333_v27, %v722_v56  ;;  %v1041_v11 = vmul.f32 %v2339_v32, %v695_v46 }
  0xb3   : > { %v871_v2 = vadd.f32 %v2329_v25, %v839_v60  ;;  %v1003_v10 = vadd.f32 %v2356_v41, %v935_v62  ;;  %v1107_v63 = vmul.f32 %v2344_v35, %v2306_v8  ;;  %v1177_v13 = vmul.f32 %v2359_v43, %v722_v56  ;;  %v2475_v62 = vld [vmem:[%s2280_s29 + $0x38] sm:$0xff] }
  0xb4   : > { %v1409_v37 = vadd.f32 %v1377_v1, %v1341_v52  ;;  %v1206_v1 = vadd.f32 %v1174_v29, %v1138_v6  ;;  %v612_v15 = vrot.slane %v2415_v31, 7  ;;  %v804_v16 = vsel %vm710_vm1, %v721_v45, 0.0 }
  0xb5   : > { %v939_v14 = vadd.f32 %v907_v61, %v871_v2  ;;  %v1071_v41 = vadd.f32 %v2367_v49, %v1003_v10  ;;  %v868_v19 = vadd.f32 %v2329_v25, %v836_v5  ;;  %v904_v8 = vmul.f32 %v2331_v26, %v2303_v7 }
  0xb6   : > { %1441 = vst [vmem:[%s2442_s9] sm:$0xff] %v1409_v37  ;;  %v1274_v21 = vadd.f32 %v1242_v33, %v1206_v1  ;;  %v1243_v23 = vmul.f32 %v2361_v44, %v695_v46  ;;  %v1311_v24 = vmul.f32 %v2364_v48, %v2399_v17  ;;  %v613_v28 = vsel %vm601_vm0, %v611_v34, %v612_v15 }
  0xb7   : > { %v1139_v29 = vadd.f32 %v1107_v63, %v1071_v41  ;;  %v840_v38 = vmul.f32 %v2322_v22, %v613_v28  ;;  %v908_v39 = vmul.f32 %v2331_v26, %v2415_v31  ;;  %v936_v49 = vadd.f32 %v904_v8, %v868_v19 }
  0xb8   : > { %v1342_v5 = vadd.f32 %v1310_v54, %v1274_v21  ;;  %v2462_v7 = vadd.f32 %v975_v58, %v939_v14  ;;  %v1379_v42 = vmul.f32 %v2371_v51, %v722_v56  ;;  %v976_v45 = vmul.f32 %v2333_v27, %v804_v16 }
  0xb9   : > { %v1207_v34 = vadd.f32 %v2376_v55, %v1139_v29  ;;  %v872_v33 = vadd.f32 %v2329_v25, %v840_v38  ;;  %v1004_v46 = vadd.f32 %v972_v18, %v936_v49  ;;  %v1108_v47 = vmul.f32 %v2344_v35, %v2313_v12 }
  0xba   : > { %v1410_v50 = vadd.f32 %v1378_v59, %v1342_v5  ;;  %v1042_v52 = vmul.f32 %v2339_v32, %v613_v28  ;;  %v1178_v53 = vmul.f32 %v2359_v43, %v804_v16  ;;  %v614_v54 = vrot.slane %v2460_v40, 7 }
  0xbb   : > { %v1275_v60 = vadd.f32 %v1243_v23, %v1207_v34  ;;  %v940_v61 = vadd.f32 %v908_v39, %v872_v33  ;;  %v1072_v56 = vadd.f32 %v2405_v20, %v1004_v46  ;;  %v723_v55 = vrot.slane %v2460_v40, 1  ;;  %v2511_v34 = vld [vmem:[%s2280_s29 + $0x40] sm:$0xff] }
  0xbc   : > { %1442 = vst [vmem:[%s2442_s9 + $0x8] sm:$0xff] %v1410_v50  ;;  %v1244_v18 = vmul.f32 %v2361_v44, %v613_v28  ;;  %v696_v12 = vsel %vm601_vm0, 0.0, %v614_v54  ;;  %v724_v59 = vrot.slane %v2475_v62, 1  ;;  %v1073_v37 = vadd.f32 %v1041_v11, %v2379_v57 }
  0xbd   : > { %v1343_v6 = vadd.f32 %v1311_v24, %v1275_v60  ;;  %v1140_v58 = vadd.f32 %v1108_v47, %v1072_v56  ;;  %v841_v2 = vmul.f32 %v2322_v22, %v696_v12  ;;  %v909_v20 = vmul.f32 %v2331_v26, %v2460_v40  ;;  %v2523_v56 = vld [vmem:[%s2280_s29 + $0x48] sm:$0xff] }
  0xbe   : > { %v1312_v10 = vmul.f32 %v2364_v48, %v2415_v31  ;;  %v1380_v63 = vmul.f32 %v2371_v51, %v804_v16  ;;  %v725_v1 = vsel %vm710_vm1, %v723_v55, %v724_v59  ;;  %v1109_v15 = vmul.f32 %v2344_v35, %v2399_v17 }
  0xbf   : > { %v1411_v14 = vadd.f32 %v1379_v42, %v1343_v6  ;;  %v2492_v57 = vadd.f32 %v976_v45, %v940_v61  ;;  %v1208_v11 = vadd.f32 %v2412_v30, %v1140_v58  ;;  %v873_v41 = vadd.f32 %v2329_v25, %v841_v2 }
  0xc0   : > { %v977_v19 = vmul.f32 %v2333_v27, %v725_v1  ;;  %v1043_v8 = vmul.f32 %v2339_v32, %v696_v12  ;;  %v1141_v21 = vadd.f32 %v1109_v15, %v1073_v37  ;;  %v1245_v16 = vmul.f32 %v2361_v44, %v696_v12 }
  0xc1   : > { %1443 = vst [vmem:[%s2442_s9 + $0x10] sm:$0xff] %v1411_v14  ;;  %v1276_v23 = vadd.f32 %v1244_v18, %v1208_v11  ;;  %v941_v24 = vadd.f32 %v909_v20, %v873_v41  ;;  %v615_v17 = vrot.slane %v2475_v62, 7  ;;  %v805_v28 = vsel %vm710_vm1, %v724_v59, 0.0 }
  0xc2   : > { %v1179_v29 = vmul.f32 %v2359_v43, %v725_v1  ;;  %v1209_v30 = vadd.f32 %v1177_v13, %v1141_v21  ;;  %v1313_v38 = vmul.f32 %v2364_v48, %v2460_v40  ;;  %v1074_v39 = vadd.f32 %v1042_v52, %v2432_v0 }
  0xc3   : > { %v1344_v49 = vadd.f32 %v1312_v10, %v1276_v23  ;;  %v1381_v5 = vmul.f32 %v2371_v51, %v725_v1  ;;  %v616_v42 = vsel %vm601_vm0, %v614_v54, %v615_v17  ;;  %v1110_v45 = vmul.f32 %v2344_v35, %v2415_v31 }
  0xc4   : > { %v1277_v33 = vadd.f32 %v1245_v16, %v1209_v30  ;;  %v842_v13 = vmul.f32 %v2322_v22, %v616_v42  ;;  %v910_v46 = vmul.f32 %v2331_v26, %v2475_v62  ;;  %v978_v0 = vmul.f32 %v2333_v27, %v805_v28 }
  0xc5   : > { %v1412_v47 = vadd.f32 %v1380_v63, %v1344_v49  ;;  %v2517_v50 = vadd.f32 %v977_v19, %v941_v24  ;;  %v1142_v52 = vadd.f32 %v1110_v45, %v1074_v39  ;;  %v1246_v54 = vmul.f32 %v2361_v44, %v616_v42  ;;  %v2559_v45 = vld [vmem:[%s2280_s29 + $0x50] sm:$0xff] }
  0xc6   : > { %v1345_v60 = vadd.f32 %v1313_v38, %v1277_v33  ;;  %v874_v61 = vadd.f32 %v2329_v25, %v842_v13  ;;  %v1044_v31 = vmul.f32 %v2339_v32, %v616_v42  ;;  %v617_v55 = vrot.slane %v2511_v34, 7 }
  0xc7   : > { %1444 = vst [vmem:[%s2442_s9 + $0x18] sm:$0xff] %v1412_v47  ;;  %v1210_v18 = vadd.f32 %v1178_v53, %v1142_v52  ;;  %v1314_v12 = vmul.f32 %v2364_v48, %v2475_v62  ;;  %v726_v59 = vrot.slane %v2511_v34, 1  ;;  %v727_v37 = vrot.slane %v2523_v56, 1 }
  0xc8   : > { %v1413_v6 = vadd.f32 %v1381_v5, %v1345_v60  ;;  %v942_v58 = vadd.f32 %v910_v46, %v874_v61  ;;  %v697_v2 = vsel %vm601_vm0, 0.0, %v617_v55  ;;  %v1075_v20 = vadd.f32 %v1043_v8, %v2462_v7  ;;  %v2572_v60 = vld [vmem:[%s2280_s29 + $0x58] sm:$0xff] }
  0xc9   : > { %v1278_v10 = vadd.f32 %v1246_v54, %v1210_v18  ;;  %v1382_v63 = vmul.f32 %v2371_v51, %v805_v28  ;;  %v728_v1 = vsel %vm710_vm1, %v726_v59, %v727_v37  ;;  %v843_v53 = vmul.f32 %v2322_v22, %v697_v2 }
  0xca   : > { %1445 = vst [vmem:[%s2442_s9 + $0x20] sm:$0xff] %v1413_v6  ;;  %v1180_v15 = vmul.f32 %v2359_v43, %v805_v28  ;;  %v911_v14 = vmul.f32 %v2331_v26, %v2511_v34  ;;  %v1045_v11 = vmul.f32 %v2339_v32, %v697_v2  ;;  %v1111_v41 = vmul.f32 %v2344_v35, %v2460_v40 }
  0xcb   : > { %v2543_v19 = vadd.f32 %v978_v0, %v942_v58  ;;  %v1346_v7 = vadd.f32 %v1314_v12, %v1278_v10  ;;  %v875_v8 = vadd.f32 %v2329_v25, %v843_v53  ;;  %v979_v21 = vmul.f32 %v2333_v27, %v728_v1 }
  0xcc   : > { %v1143_v16 = vadd.f32 %v1111_v41, %v1075_v20  ;;  %v1247_v23 = vmul.f32 %v2361_v44, %v697_v2  ;;  %v618_v24 = vrot.slane %v2523_v56, 7  ;;  %v806_v17 = vsel %vm710_vm1, %v727_v37, 0.0 }
  0xcd   : > { %v1414_v28 = vadd.f32 %v1382_v63, %v1346_v7  ;;  %v1181_v30 = vmul.f32 %v2359_v43, %v728_v1  ;;  %v1315_v40 = vmul.f32 %v2364_v48, %v2511_v34  ;;  %v1383_v38 = vmul.f32 %v2371_v51, %v728_v1 }
  0xce   : > { %v1211_v39 = vadd.f32 %v1179_v29, %v1143_v16  ;;  %v619_v49 = vsel %vm601_vm0, %v617_v55, %v618_v24  ;;  %v1076_v5 = vadd.f32 %v1044_v31, %v2492_v57  ;;  %v1112_v42 = vmul.f32 %v2344_v35, %v2475_v62 }
  0xcf   : > { %1446 = vst [vmem:[%s2442_s9 + $0x28] sm:$0xff] %v1414_v28  ;;  %v943_v33 = vadd.f32 %v911_v14, %v875_v8  ;;  %v844_v13 = vmul.f32 %v2322_v22, %v619_v49  ;;  %v912_v46 = vmul.f32 %v2331_v26, %v2523_v56  ;;  %v980_v0 = vmul.f32 %v2333_v27, %v806_v17 }
  0xd0   : > { %v1279_v29 = vadd.f32 %v1247_v23, %v1211_v39  ;;  %v1144_v47 = vadd.f32 %v1112_v42, %v1076_v5  ;;  %v1248_v52 = vmul.f32 %v2361_v44, %v619_v49  ;;  %v1316_v57 = vmul.f32 %v2364_v48, %v2523_v56 }
  0xd1   : > { %v876_v62 = vadd.f32 %v2329_v25, %v844_v13  ;;  %v1384_v54 = vmul.f32 %v2371_v51, %v806_v17  ;;  %v620_v61 = vrot.slane %v2559_v45, 7  ;;  %v729_v31 = vrot.slane %v2559_v45, 1 }
  0xd2   : > { %v1347_v55 = vadd.f32 %v1315_v40, %v1279_v29  ;;  %v1212_v18 = vadd.f32 %v1180_v15, %v1144_v47  ;;  %v730_v12 = vrot.slane %v2572_v60, 1  ;;  %v913_v59 = vmul.f32 %v2331_v26, %v2559_v45 }
  0xd3   : > { %v944_v37 = vadd.f32 %v912_v46, %v876_v62  ;;  %v698_v6 = vsel %vm601_vm0, 0.0, %v620_v61  ;;  %v1077_v58 = vadd.f32 %v1045_v11, %v2517_v50  ;;  %v1113_v2 = vmul.f32 %v2344_v35, %v2511_v34 }
  0xd4   : > { %v1415_v20 = vadd.f32 %v1383_v38, %v1347_v55  ;;  %v1280_v10 = vadd.f32 %v1248_v52, %v1212_v18  ;;  %v731_v63 = vsel %vm710_vm1, %v729_v31, %v730_v12  ;;  %v845_v1 = vmul.f32 %v2322_v22, %v698_v6 }
  0xd5   : > { %v1011_v53 = vadd.f32 %v979_v21, %v943_v33  ;;  %v1046_v15 = vmul.f32 %v2339_v32, %v619_v49  ;;  %v1182_v14 = vmul.f32 %v2359_v43, %v806_v17  ;;  %v1145_v41 = vadd.f32 %v1113_v2, %v1077_v58 }
  0xd6   : > { %1447 = vst [vmem:[%s2442_s9 + $0x30] sm:$0xff] %v1415_v20  ;;  %v2588_v7 = vadd.f32 %v980_v0, %v944_v37  ;;  %v1348_v50 = vadd.f32 %v1316_v57, %v1280_v10  ;;  %v877_v34 = vadd.f32 %v2329_v25, %v845_v1  ;;  %v1249_v11 = vmul.f32 %v2361_v44, %v698_v6 }
  0xd7   : > { %v981_v8 = vmul.f32 %v2333_v27, %v731_v63  ;;  %v1213_v16 = vadd.f32 %v1181_v30, %v1145_v41  ;;  %v1317_v21 = vmul.f32 %v2364_v48, %v2559_v45  ;;  %v621_v23 = vrot.slane %v2572_v60, 7  ;;  %v2602_v30 = vld [vmem:[%s2280_s29 + $0x60] sm:$0xff] }
  0xd8   : > { %v1416_v24 = vadd.f32 %v1384_v54, %v1348_v50  ;;  %v945_v17 = vadd.f32 %v913_v59, %v877_v34  ;;  %v1047_v28 = vmul.f32 %v2339_v32, %v698_v6  ;;  %v807_v40 = vsel %vm710_vm1, %v730_v12, 0.0  ;;  %v2618_v54 = vld [vmem:[%s2280_s29 + $0x68] sm:$0xff] }
  0xd9   : > { %v1281_v38 = vadd.f32 %v1249_v11, %v1213_v16  ;;  %v1385_v39 = vmul.f32 %v2371_v51, %v731_v63  ;;  %v622_v49 = vsel %vm601_vm0, %v620_v61, %v621_v23  ;;  %v1078_v5 = vadd.f32 %v1046_v15, %v2543_v19 }
  0xda   : > { %1448 = vst [vmem:[%s2442_s9 + $0x38] sm:$0xff] %v1416_v24  ;;  %v1183_v42 = vmul.f32 %v2359_v43, %v731_v63  ;;  %v846_v33 = vmul.f32 %v2322_v22, %v622_v49  ;;  %v914_v13 = vmul.f32 %v2331_v26, %v2572_v60  ;;  %v1114_v46 = vmul.f32 %v2344_v35, %v2523_v56 }
  0xdb   : > { %v2611_v0 = vadd.f32 %v981_v8, %v945_v17  ;;  %v1349_v29 = vadd.f32 %v1317_v21, %v1281_v38  ;;  %v982_v47 = vmul.f32 %v2333_v27, %v807_v40  ;;  %v1048_v19 = vmul.f32 %v2339_v32, %v622_v49 }
  0xdc   : > { %v878_v52 = vadd.f32 %v2329_v25, %v846_v33  ;;  %v1146_v57 = vadd.f32 %v1114_v46, %v1078_v5  ;;  %v1250_v62 = vmul.f32 %v2361_v44, %v622_v49  ;;  %v623_v61 = vrot.slane %v2602_v30, 7  ;;  %v2651_v49 = vld [vmem:[%s2280_s29 + $0x70] sm:$0xff] }
  0xdd   : > { %v1417_v31 = vadd.f32 %v1385_v39, %v1349_v29  ;;  %v1318_v56 = vmul.f32 %v2364_v48, %v2572_v60  ;;  %v732_v55 = vrot.slane %v2602_v30, 1  ;;  %v733_v18 = vrot.slane %v2618_v54, 1 }
  0xde   : > { %v946_v12 = vadd.f32 %v914_v13, %v878_v52  ;;  %v1214_v59 = vadd.f32 %v1182_v14, %v1146_v57  ;;  %v699_v37 = vsel %vm601_vm0, 0.0, %v623_v61  ;;  %v1079_v6 = vadd.f32 %v1047_v28, %v1011_v53  ;;  %v2665_v57 = vld [vmem:[%s2280_s29 + $0x78] sm:$0xff] }
  0xdf   : > { %1449 = vst [vmem:[%s2442_s9 + $0x40] sm:$0xff] %v1417_v31  ;;  %v734_v58 = vsel %vm710_vm1, %v732_v55, %v733_v18  ;;  %v847_v2 = vmul.f32 %v2322_v22, %v699_v37  ;;  %v915_v20 = vmul.f32 %v2331_v26, %v2602_v30  ;;  %v1115_v10 = vmul.f32 %v2344_v35, %v2559_v45 }
  0xe0   : > { %v1184_v63 = vmul.f32 %v2359_v43, %v807_v40  ;;  %v1282_v1 = vadd.f32 %v1250_v62, %v1214_v59  ;;  %v1386_v15 = vmul.f32 %v2371_v51, %v807_v40  ;;  %v1049_v14 = vmul.f32 %v2339_v32, %v699_v37 }
  0xe1   : > { %v2636_v41 = vadd.f32 %v982_v47, %v946_v12  ;;  %v879_v53 = vadd.f32 %v2329_v25, %v847_v2  ;;  %v1147_v50 = vadd.f32 %v1115_v10, %v1079_v6  ;;  %v1251_v34 = vmul.f32 %v2361_v44, %v699_v37 }
  0xe2   : > { %v1350_v11 = vadd.f32 %v1318_v56, %v1282_v1  ;;  %v983_v8 = vmul.f32 %v2333_v27, %v734_v58  ;;  %v1185_v45 = vmul.f32 %v2359_v43, %v734_v58  ;;  %v624_v16 = vrot.slane %v2618_v54, 7 }
  0xe3   : > { %v947_v21 = vadd.f32 %v915_v20, %v879_v53  ;;  %v1215_v23 = vadd.f32 %v1183_v42, %v1147_v50  ;;  %v1319_v24 = vmul.f32 %v2364_v48, %v2602_v30  ;;  %v808_v17 = vsel %vm710_vm1, %v733_v18, 0.0 }
  0xe4   : > { %v1418_v28 = vadd.f32 %v1386_v15, %v1350_v11  ;;  %v625_v40 = vsel %vm601_vm0, %v623_v61, %v624_v16  ;;  %v1080_v38 = vadd.f32 %v1048_v19, %v2588_v7  ;;  %v1116_v39 = vmul.f32 %v2344_v35, %v2572_v60 }
  0xe5   : > { %v1283_v5 = vadd.f32 %v1251_v34, %v1215_v23  ;;  %v1387_v33 = vmul.f32 %v2371_v51, %v734_v58  ;;  %v848_v42 = vmul.f32 %v2322_v22, %v625_v40  ;;  %v916_v13 = vmul.f32 %v2331_v26, %v2618_v54 }
  0xe6   : > { %1450 = vst [vmem:[%s2442_s9 + $0x48] sm:$0xff] %v1418_v28  ;;  %v2658_v46 = vadd.f32 %v983_v8, %v947_v21  ;;  %v984_v29 = vmul.f32 %v2333_v27, %v808_v17  ;;  %v1148_v47 = vadd.f32 %v1116_v39, %v1080_v38  ;;  %v1252_v7 = vmul.f32 %v2361_v44, %v625_v40  ;;  %v2700_v39 = vld [vmem:[%s2280_s29 + $0x80] sm:$0xff] }
  0xe7   : > { %v1351_v19 = vadd.f32 %v1319_v24, %v1283_v5  ;;  %v880_v60 = vadd.f32 %v2329_v25, %v848_v42  ;;  %v1050_v52 = vmul.f32 %v2339_v32, %v625_v40  ;;  %v626_v62 = vrot.slane %v2651_v49, 7 }
  0xe8   : > { %v1216_v61 = vadd.f32 %v1184_v63, %v1148_v47  ;;  %v1320_v31 = vmul.f32 %v2364_v48, %v2618_v54  ;;  %v735_v56 = vrot.slane %v2651_v49, 1  ;;  %v736_v55 = vrot.slane %v2665_v57, 1 }
  0xe9   : > { %v1419_v18 = vadd.f32 %v1387_v33, %v1351_v19  ;;  %v948_v12 = vadd.f32 %v916_v13, %v880_v60  ;;  %v700_v59 = vsel %vm601_vm0, 0.0, %v626_v62  ;;  %v1081_v37 = vadd.f32 %v1049_v14, %v2611_v0  ;;  %v2713_v19 = vld [vmem:[%s2280_s29 + $0x88] sm:$0xff] }
  0xea   : > { %v1284_v6 = vadd.f32 %v1252_v7, %v1216_v61  ;;  %v1388_v58 = vmul.f32 %v2371_v51, %v808_v17  ;;  %v737_v2 = vsel %vm710_vm1, %v735_v56, %v736_v55  ;;  %v849_v20 = vmul.f32 %v2322_v22, %v700_v59 }
  0xeb   : > { %1451 = vst [vmem:[%s2442_s9 + $0x50] sm:$0xff] %v1419_v18  ;;  %v1186_v10 = vmul.f32 %v2359_v43, %v808_v17  ;;  %v917_v63 = vmul.f32 %v2331_v26, %v2651_v49  ;;  %v1051_v1 = vmul.f32 %v2339_v32, %v700_v59  ;;  %v1117_v15 = vmul.f32 %v2344_v35, %v2602_v30 }
  0xec   : > { %v2684_v53 = vadd.f32 %v984_v29, %v948_v12  ;;  %v1352_v0 = vadd.f32 %v1320_v31, %v1284_v6  ;;  %v881_v14 = vadd.f32 %v2329_v25, %v849_v20  ;;  %v985_v50 = vmul.f32 %v2333_v27, %v737_v2 }
  0xed   : > { %v1149_v34 = vadd.f32 %v1117_v15, %v1081_v37  ;;  %v1253_v11 = vmul.f32 %v2361_v44, %v700_v59  ;;  %v627_v8 = vrot.slane %v2665_v57, 7  ;;  %v809_v16 = vsel %vm710_vm1, %v736_v55, 0.0 }
  0xee   : > { %v1420_v21 = vadd.f32 %v1388_v58, %v1352_v0  ;;  %v1187_v23 = vmul.f32 %v2359_v43, %v737_v2  ;;  %v1321_v30 = vmul.f32 %v2364_v48, %v2651_v49  ;;  %v1389_v24 = vmul.f32 %v2371_v51, %v737_v2 }
  0xef   : > { %v1217_v17 = vadd.f32 %v1185_v45, %v1149_v34  ;;  %v628_v28 = vsel %vm601_vm0, %v626_v62, %v627_v8  ;;  %v1082_v40 = vadd.f32 %v1050_v52, %v2636_v41  ;;  %v1118_v38 = vmul.f32 %v2344_v35, %v2618_v54 }
  0xf0   : > { %1452 = vst [vmem:[%s2442_s9 + $0x58] sm:$0xff] %v1420_v21  ;;  %v949_v5 = vadd.f32 %v917_v63, %v881_v14  ;;  %v850_v33 = vmul.f32 %v2322_v22, %v628_v28  ;;  %v918_v42 = vmul.f32 %v2331_v26, %v2665_v57  ;;  %v986_v13 = vmul.f32 %v2333_v27, %v809_v16 }
  0xf1   : > { %v1285_v45 = vadd.f32 %v1253_v11, %v1217_v17  ;;  %v1150_v29 = vadd.f32 %v1118_v38, %v1082_v40  ;;  %v1254_v47 = vmul.f32 %v2361_v44, %v628_v28  ;;  %v1322_v41 = vmul.f32 %v2364_v48, %v2665_v57 }
  0xf2   : > { %v882_v54 = vadd.f32 %v2329_v25, %v850_v33  ;;  %v1390_v7 = vmul.f32 %v2371_v51, %v809_v16  ;;  %v629_v60 = vrot.slane %v2700_v39, 7  ;;  %v738_v52 = vrot.slane %v2700_v39, 1 }
  0xf3   : > { %v1353_v62 = vadd.f32 %v1321_v30, %v1285_v45  ;;  %v1218_v61 = vadd.f32 %v1186_v10, %v1150_v29  ;;  %v739_v31 = vrot.slane %v2713_v19, 1  ;;  %v919_v56 = vmul.f32 %v2331_v26, %v2700_v39 }
  0xf4   : > { %v950_v55 = vadd.f32 %v918_v42, %v882_v54  ;;  %v701_v18 = vsel %vm601_vm0, 0.0, %v629_v60  ;;  %v1083_v12 = vadd.f32 %v1051_v1, %v2658_v46  ;;  %v1119_v59 = vmul.f32 %v2344_v35, %v2651_v49 }
  0xf5   : > { %v1421_v37 = vadd.f32 %v1389_v24, %v1353_v62  ;;  %v1286_v6 = vadd.f32 %v1254_v47, %v1218_v61  ;;  %v740_v58 = vsel %vm710_vm1, %v738_v52, %v739_v31  ;;  %v851_v2 = vmul.f32 %v2322_v22, %v701_v18 }
  0xf6   : > { %v1017_v20 = vadd.f32 %v985_v50, %v949_v5  ;;  %v1052_v10 = vmul.f32 %v2339_v32, %v628_v28  ;;  %v1188_v63 = vmul.f32 %v2359_v43, %v809_v16  ;;  %v1151_v15 = vadd.f32 %v1119_v59, %v1083_v12 }
  0xf7   : > { %1453 = vst [vmem:[%s2442_s9 + $0x60] sm:$0xff] %v1421_v37  ;;  %v2729_v0 = vadd.f32 %v986_v13, %v950_v55  ;;  %v1354_v46 = vadd.f32 %v1322_v41, %v1286_v6  ;;  %v883_v49 = vadd.f32 %v2329_v25, %v851_v2  ;;  %v1255_v1 = vmul.f32 %v2361_v44, %v701_v18 }
  0xf8   : > { %v987_v14 = vmul.f32 %v2333_v27, %v740_v58  ;;  %v1219_v34 = vadd.f32 %v1187_v23, %v1151_v15  ;;  %v1323_v50 = vmul.f32 %v2364_v48, %v2700_v39  ;;  %v630_v11 = vrot.slane %v2713_v19, 7  ;;  %v2743_v23 = vld [vmem:[%s2280_s29 + $0x90] sm:$0xff] }
  0xf9   : > { %v1422_v8 = vadd.f32 %v1390_v7, %v1354_v46  ;;  %v951_v16 = vadd.f32 %v919_v56, %v883_v49  ;;  %v1053_v21 = vmul.f32 %v2339_v32, %v701_v18  ;;  %v810_v30 = vsel %vm710_vm1, %v739_v31, 0.0  ;;  %v2759_v7 = vld [vmem:[%s2280_s29 + $0x98] sm:$0xff] }
  0xfa   : > { %v1287_v24 = vadd.f32 %v1255_v1, %v1219_v34  ;;  %v1391_v17 = vmul.f32 %v2371_v51, %v740_v58  ;;  %v631_v28 = vsel %vm601_vm0, %v629_v60, %v630_v11  ;;  %v1084_v40 = vadd.f32 %v1052_v10, %v2684_v53 }
  0xfb   : > { %1454 = vst [vmem:[%s2442_s9 + $0x68] sm:$0xff] %v1422_v8  ;;  %v1189_v38 = vmul.f32 %v2359_v43, %v740_v58  ;;  %v852_v5 = vmul.f32 %v2322_v22, %v631_v28  ;;  %v920_v33 = vmul.f32 %v2331_v26, %v2713_v19  ;;  %v1120_v42 = vmul.f32 %v2344_v35, %v2665_v57 }
  0xfc   : > { %v2752_v13 = vadd.f32 %v987_v14, %v951_v16  ;;  %v1355_v45 = vadd.f32 %v1323_v50, %v1287_v24  ;;  %v988_v29 = vmul.f32 %v2333_v27, %v810_v30  ;;  %v1054_v53 = vmul.f32 %v2339_v32, %v631_v28 }
  0xfd   : > { %v884_v47 = vadd.f32 %v2329_v25, %v852_v5  ;;  %v1152_v41 = vadd.f32 %v1120_v42, %v1084_v40  ;;  %v1256_v54 = vmul.f32 %v2361_v44, %v631_v28  ;;  %v632_v60 = vrot.slane %v2743_v23, 7  ;;  %v2792_v28 = vld [vmem:[%s2280_s29 + $0xa0] sm:$0xff] }
  0xfe   : > { %v1423_v52 = vadd.f32 %v1391_v17, %v1355_v45  ;;  %v1324_v57 = vmul.f32 %v2364_v48, %v2713_v19  ;;  %v741_v62 = vrot.slane %v2743_v23, 1  ;;  %v742_v61 = vrot.slane %v2759_v7, 1 }
  0xff   : > { %v952_v31 = vadd.f32 %v920_v33, %v884_v47  ;;  %v1220_v56 = vadd.f32 %v1188_v63, %v1152_v41  ;;  %v702_v55 = vsel %vm601_vm0, 0.0, %v632_v60  ;;  %v1085_v18 = vadd.f32 %v1053_v21, %v1017_v20  ;;  %v2806_v41 = vld [vmem:[%s2280_s29 + $0xa8] sm:$0xff] }
 0x100   : > { %1455 = vst [vmem:[%s2442_s9 + $0x70] sm:$0xff] %v1423_v52  ;;  %v743_v12 = vsel %vm710_vm1, %v741_v62, %v742_v61  ;;  %v853_v59 = vmul.f32 %v2322_v22, %v702_v55  ;;  %v921_v37 = vmul.f32 %v2331_v26, %v2743_v23  ;;  %v1121_v6 = vmul.f32 %v2344_v35, %v2700_v39 }
 0x101   : > { %v1190_v58 = vmul.f32 %v2359_v43, %v810_v30  ;;  %v1288_v2 = vadd.f32 %v1256_v54, %v1220_v56  ;;  %v1392_v10 = vmul.f32 %v2371_v51, %v810_v30  ;;  %v1055_v63 = vmul.f32 %v2339_v32, %v702_v55 }
 0x102   : > { %v2777_v15 = vadd.f32 %v988_v29, %v952_v31  ;;  %v885_v20 = vadd.f32 %v2329_v25, %v853_v59  ;;  %v1153_v46 = vadd.f32 %v1121_v6, %v1085_v18  ;;  %v1257_v49 = vmul.f32 %v2361_v44, %v702_v55 }
 0x103   : > { %v1356_v1 = vadd.f32 %v1324_v57, %v1288_v2  ;;  %v989_v14 = vmul.f32 %v2333_v27, %v743_v12  ;;  %v1191_v39 = vmul.f32 %v2359_v43, %v743_v12  ;;  %v633_v34 = vrot.slane %v2759_v7, 7 }
 0x104   : > { %v953_v50 = vadd.f32 %v921_v37, %v885_v20  ;;  %v1221_v11 = vadd.f32 %v1189_v38, %v1153_v46  ;;  %v1325_v8 = vmul.f32 %v2364_v48, %v2743_v23  ;;  %v811_v16 = vsel %vm710_vm1, %v742_v61, 0.0 }
 0x105   : > { %v1424_v21 = vadd.f32 %v1392_v10, %v1356_v1  ;;  %v634_v30 = vsel %vm601_vm0, %v632_v60, %v633_v34  ;;  %v1086_v24 = vadd.f32 %v1054_v53, %v2729_v0  ;;  %v1122_v17 = vmul.f32 %v2344_v35, %v2713_v19 }
 0x106   : > { %v1289_v40 = vadd.f32 %v1257_v49, %v1221_v11  ;;  %v1393_v5 = vmul.f32 %v2371_v51, %v743_v12  ;;  %v854_v38 = vmul.f32 %v2322_v22, %v634_v30  ;;  %v922_v33 = vmul.f32 %v2331_v26, %v2759_v7 }
 0x107   : > { %1456 = vst [vmem:[%s2442_s9 + $0x78] sm:$0xff] %v1424_v21  ;;  %v2799_v42 = vadd.f32 %v989_v14, %v953_v50  ;;  %v990_v45 = vmul.f32 %v2333_v27, %v811_v16  ;;  %v1154_v29 = vadd.f32 %v1122_v17, %v1086_v24  ;;  %v1258_v0 = vmul.f32 %v2361_v44, %v634_v30  ;;  %v2841_v17 = vld [vmem:[%s2280_s29 + $0xb0] sm:$0xff] }
 0x108   : > { %v1357_v53 = vadd.f32 %v1325_v8, %v1289_v40  ;;  %v886_v19 = vadd.f32 %v2329_v25, %v854_v38  ;;  %v1056_v47 = vmul.f32 %v2339_v32, %v634_v30  ;;  %v635_v54 = vrot.slane %v2792_v28, 7 }
 0x109   : > { %v1222_v60 = vadd.f32 %v1190_v58, %v1154_v29  ;;  %v1326_v52 = vmul.f32 %v2364_v48, %v2759_v7  ;;  %v744_v57 = vrot.slane %v2792_v28, 1  ;;  %v745_v62 = vrot.slane %v2806_v41, 1 }
 0x10a   : > { %v1425_v61 = vadd.f32 %v1393_v5, %v1357_v53  ;;  %v954_v31 = vadd.f32 %v922_v33, %v886_v19  ;;  %v703_v56 = vsel %vm601_vm0, 0.0, %v635_v54  ;;  %v1087_v55 = vadd.f32 %v1055_v63, %v2752_v13  ;;  %v2854_v53 = vld [vmem:[%s2280_s29 + $0xb8] sm:$0xff] }
 0x10b   : > { %v1290_v18 = vadd.f32 %v1258_v0, %v1222_v60  ;;  %v1394_v12 = vmul.f32 %v2371_v51, %v811_v16  ;;  %v746_v59 = vsel %vm710_vm1, %v744_v57, %v745_v62  ;;  %v855_v37 = vmul.f32 %v2322_v22, %v703_v56 }
 0x10c   : > { %1457 = vst [vmem:[%s2442_s9 + $0x80] sm:$0xff] %v1425_v61  ;;  %v1192_v6 = vmul.f32 %v2359_v43, %v811_v16  ;;  %v923_v58 = vmul.f32 %v2331_v26, %v2792_v28  ;;  %v1057_v2 = vmul.f32 %v2339_v32, %v703_v56  ;;  %v1123_v10 = vmul.f32 %v2344_v35, %v2743_v23 }
 0x10d   : > { %v2825_v20 = vadd.f32 %v990_v45, %v954_v31  ;;  %v1358_v13 = vadd.f32 %v1326_v52, %v1290_v18  ;;  %v887_v63 = vadd.f32 %v2329_v25, %v855_v37  ;;  %v991_v46 = vmul.f32 %v2333_v27, %v746_v59 }
 0x10e   : > { %v1155_v49 = vadd.f32 %v1123_v10, %v1087_v55  ;;  %v1259_v1 = vmul.f32 %v2361_v44, %v703_v56  ;;  %v636_v14 = vrot.slane %v2806_v41, 7  ;;  %v812_v34 = vsel %vm710_vm1, %v745_v62, 0.0 }
 0x10f   : > { %v1426_v50 = vadd.f32 %v1394_v12, %v1358_v13  ;;  %v1193_v11 = vmul.f32 %v2359_v43, %v746_v59  ;;  %v1327_v23 = vmul.f32 %v2364_v48, %v2792_v28  ;;  %v1395_v8 = vmul.f32 %v2371_v51, %v746_v59 }
 0x110   : > { %v1223_v16 = vadd.f32 %v1191_v39, %v1155_v49  ;;  %v637_v21 = vsel %vm601_vm0, %v635_v54, %v636_v14  ;;  %v1088_v30 = vadd.f32 %v1056_v47, %v2777_v15  ;;  %v1124_v24 = vmul.f32 %v2344_v35, %v2759_v7 }
 0x111   : > { %1458 = vst [vmem:[%s2442_s9 + $0x88] sm:$0xff] %v1426_v50  ;;  %v955_v40 = vadd.f32 %v923_v58, %v887_v63  ;;  %v856_v5 = vmul.f32 %v2322_v22, %v637_v21  ;;  %v924_v38 = vmul.f32 %v2331_v26, %v2806_v41  ;;  %v992_v33 = vmul.f32 %v2333_v27, %v812_v34 }
 0x112   : > { %v1291_v39 = vadd.f32 %v1259_v1, %v1223_v16  ;;  %v1156_v45 = vadd.f32 %v1124_v24, %v1088_v30  ;;  %v1260_v29 = vmul.f32 %v2361_v44, %v637_v21  ;;  %v1328_v15 = vmul.f32 %v2364_v48, %v2806_v41 }
 0x113   : > { %v888_v7 = vadd.f32 %v2329_v25, %v856_v5  ;;  %v1396_v0 = vmul.f32 %v2371_v51, %v812_v34  ;;  %v638_v19 = vrot.slane %v2841_v17, 7  ;;  %v747_v47 = vrot.slane %v2841_v17, 1 }
 0x114   : > { %v1359_v54 = vadd.f32 %v1327_v23, %v1291_v39  ;;  %v1224_v60 = vadd.f32 %v1192_v6, %v1156_v45  ;;  %v748_v52 = vrot.slane %v2854_v53, 1  ;;  %v925_v57 = vmul.f32 %v2331_v26, %v2841_v17 }
 0x115   : > { %v956_v62 = vadd.f32 %v924_v38, %v888_v7  ;;  %v704_v61 = vsel %vm601_vm0, 0.0, %v638_v19  ;;  %v1089_v25 = vadd.f32 %v1057_v2, %v2799_v42  ;;  %v1125_v31 = vmul.f32 %v2344_v35, %v2792_v28  ;;  %v2875_v28 = vld [vmem:[%s3139_s4] ss:$0 sm:$0xff] }
 0x116   : > { %v1427_v56 = vadd.f32 %v1395_v8, %v1359_v54  ;;  %v1292_v55 = vadd.f32 %v1260_v29, %v1224_v60  ;;  %v749_v18 = vsel %vm710_vm1, %v747_v47, %v748_v52  ;;  %v857_v12 = vmul.f32 %v2322_v22, %v704_v61 }
 0x117   : > { %v1023_v59 = vadd.f32 %v991_v46, %v955_v40  ;;  %v1058_v37 = vmul.f32 %v2339_v32, %v637_v21  ;;  %v1194_v6 = vmul.f32 %v2359_v43, %v812_v34  ;;  %v1157_v58 = vadd.f32 %v1125_v31, %v1089_v25 }
 0x118   : > { %1459 = vst [vmem:[%s2442_s9 + $0x90] sm:$0xff] %v1427_v56  ;;  %v2870_v10 = vadd.f32 %v992_v33, %v956_v62  ;;  %v1360_v13 = vadd.f32 %v1328_v15, %v1292_v55  ;;  %v889_v42 = vadd.f32 %v2875_v28, %v857_v12  ;;  %v1261_v2 = vmul.f32 %v2361_v44, %v704_v61 }
 0x119   : > { %v993_v63 = vmul.f32 %v2333_v27, %v749_v18  ;;  %v1225_v46 = vadd.f32 %v1193_v11, %v1157_v58  ;;  %v1329_v49 = vmul.f32 %v2364_v48, %v2841_v17  ;;  %v639_v1 = vrot.slane %v2854_v53, 7  ;;  %v2889_v11 = vld [vmem:[%s2280_s29 + $0xc0] sm:$0xff] }
 0x11a   : > { %v1428_v14 = vadd.f32 %v1396_v0, %v1360_v13  ;;  %v957_v34 = vadd.f32 %v925_v57, %v889_v42  ;;  %v1059_v50 = vmul.f32 %v2339_v32, %v704_v61  ;;  %v813_v23 = vsel %vm710_vm1, %v748_v52, 0.0  ;;  %v2905_v0 = vld [vmem:[%s2280_s29 + $0xc8] sm:$0xff] }
 0x11b   : > { %v1293_v8 = vadd.f32 %v1261_v2, %v1225_v46  ;;  %v1397_v16 = vmul.f32 %v2371_v51, %v749_v18  ;;  %v640_v21 = vsel %vm601_vm0, %v638_v19, %v639_v1  ;;  %v1090_v30 = vadd.f32 %v1058_v37, %v2825_v20 }
 0x11c   : > { %1460 = vst [vmem:[%s2442_s9 + $0x98] sm:$0xff] %v1428_v14  ;;  %v1195_v24 = vmul.f32 %v2359_v43, %v749_v18  ;;  %v858_v40 = vmul.f32 %v2322_v22, %v640_v21  ;;  %v926_v5 = vmul.f32 %v2331_v26, %v2854_v53  ;;  %v1126_v38 = vmul.f32 %v2344_v35, %v2806_v41 }
 0x11d   : > { %v2898_v33 = vadd.f32 %v993_v63, %v957_v34  ;;  %v1361_v39 = vadd.f32 %v1329_v49, %v1293_v8  ;;  %v994_v45 = vmul.f32 %v2333_v27, %v813_v23  ;;  %v1060_v20 = vmul.f32 %v2339_v32, %v640_v21 }
 0x11e   : > { %v890_v29 = vadd.f32 %v2875_v28, %v858_v40  ;;  %v1158_v15 = vadd.f32 %v1126_v38, %v1090_v30  ;;  %v1262_v7 = vmul.f32 %v2361_v44, %v640_v21  ;;  %v641_v19 = vrot.slane %v2889_v11, 7  ;;  %v2938_v21 = vld [vmem:[%s2280_s29 + $0xd0] sm:$0xff] }
 0x11f   : > { %v1429_v47 = vadd.f32 %v1397_v16, %v1361_v39  ;;  %v1330_v41 = vmul.f32 %v2364_v48, %v2854_v53  ;;  %v750_v54 = vrot.slane %v2889_v11, 1  ;;  %v751_v60 = vrot.slane %v2905_v0, 1 }
 0x120   : > { %v958_v52 = vadd.f32 %v926_v5, %v890_v29  ;;  %v1226_v57 = vadd.f32 %v1194_v6, %v1158_v15  ;;  %v705_v62 = vsel %vm601_vm0, 0.0, %v641_v19  ;;  %v1091_v61 = vadd.f32 %v1059_v50, %v1023_v59  ;;  %v2953_v15 = vld [vmem:[%s2280_s29 + $0xd8] sm:$0xff] }
 0x121   : > { %1461 = vst [vmem:[%s2442_s9 + $0xa0] sm:$0xff] %v1429_v47  ;;  %v752_v25 = vsel %vm710_vm1, %v750_v54, %v751_v60  ;;  %v859_v31 = vmul.f32 %v2322_v22, %v705_v62  ;;  %v927_v56 = vmul.f32 %v2331_v26, %v2889_v11  ;;  %v1127_v55 = vmul.f32 %v2344_v35, %v2841_v17 }
 0x122   : > { %v1196_v18 = vmul.f32 %v2359_v43, %v813_v23  ;;  %v1294_v12 = vadd.f32 %v1262_v7, %v1226_v57  ;;  %v1398_v37 = vmul.f32 %v2371_v51, %v813_v23  ;;  %v1061_v6 = vmul.f32 %v2339_v32, %v705_v62 }
 0x123   : > { %v2923_v58 = vadd.f32 %v994_v45, %v958_v52  ;;  %v891_v59 = vadd.f32 %v2875_v28, %v859_v31  ;;  %v1159_v13 = vadd.f32 %v1127_v55, %v1091_v61  ;;  %v1263_v42 = vmul.f32 %v2361_v44, %v705_v62 }
 0x124   : > { %v1362_v2 = vadd.f32 %v1330_v41, %v1294_v12  ;;  %v995_v63 = vmul.f32 %v2333_v27, %v752_v25  ;;  %v1197_v17 = vmul.f32 %v2359_v43, %v752_v25  ;;  %v642_v46 = vrot.slane %v2905_v0, 7 }
 0x125   : > { %v959_v49 = vadd.f32 %v927_v56, %v891_v59  ;;  %v1227_v1 = vadd.f32 %v1195_v24, %v1159_v13  ;;  %v1331_v14 = vmul.f32 %v2364_v48, %v2889_v11  ;;  %v814_v34 = vsel %vm710_vm1, %v751_v60, 0.0 }
 0x126   : > { %v1430_v50 = vadd.f32 %v1398_v37, %v1362_v2  ;;  %v643_v23 = vsel %vm601_vm0, %v641_v19, %v642_v46  ;;  %v1092_v8 = vadd.f32 %v1060_v20, %v2870_v10  ;;  %v1128_v16 = vmul.f32 %v2344_v35, %v2854_v53 }
 0x127   : > { %v1295_v30 = vadd.f32 %v1263_v42, %v1227_v1  ;;  %v1399_v40 = vmul.f32 %v2371_v51, %v752_v25  ;;  %v860_v24 = vmul.f32 %v2322_v22, %v643_v23  ;;  %v928_v5 = vmul.f32 %v2331_v26, %v2905_v0 }
 0x128   : > { %1462 = vst [vmem:[%s2442_s9 + $0xa8] sm:$0xff] %v1430_v50  ;;  %v2945_v38 = vadd.f32 %v995_v63, %v959_v49  ;;  %v996_v39 = vmul.f32 %v2333_v27, %v814_v34  ;;  %v1160_v45 = vadd.f32 %v1128_v16, %v1092_v8  ;;  %v1264_v10 = vmul.f32 %v2361_v44, %v643_v23  ;;  %v2986_v16 = vld [vmem:[%s2280_s29 + $0xe0] sm:$0xff] }
 0x129   : > { %v1363_v20 = vadd.f32 %v1331_v14, %v1295_v30  ;;  %v892_v53 = vadd.f32 %v2875_v28, %v860_v24  ;;  %v1332_v29 = vmul.f32 %v2364_v48, %v2905_v0  ;;  %v644_v7 = vrot.slane %v2938_v21, 7 }
 0x12a   : > { %v1228_v19 = vadd.f32 %v1196_v18, %v1160_v45  ;;  %v1400_v47 = vmul.f32 %v2371_v51, %v814_v34  ;;  %v753_v41 = vrot.slane %v2938_v21, 1  ;;  %v754_v54 = vrot.slane %v2953_v15, 1 }
 0x12b   : > { %v1431_v60 = vadd.f32 %v1399_v40, %v1363_v20  ;;  %v960_v52 = vadd.f32 %v928_v5, %v892_v53  ;;  %v706_v57 = vsel %vm601_vm0, 0.0, %v644_v7  ;;  %v1093_v62 = vadd.f32 %v1061_v6, %v2898_v33  ;;  %v2999_v20 = vld [vmem:[%s2280_s29 + $0xe8] sm:$0xff] }
 0x12c   : > { %v1296_v61 = vadd.f32 %v1264_v10, %v1228_v19  ;;  %v755_v25 = vsel %vm710_vm1, %v753_v41, %v754_v54  ;;  %v861_v31 = vmul.f32 %v2322_v22, %v706_v57  ;;  %v929_v56 = vmul.f32 %v2331_v26, %v2938_v21 }
 0x12d   : > { %1463 = vst [vmem:[%s2442_s9 + $0xb0] sm:$0xff] %v1431_v60  ;;  %v1062_v55 = vmul.f32 %v2339_v32, %v643_v23  ;;  %v1198_v18 = vmul.f32 %v2359_v43, %v814_v34  ;;  %v1063_v12 = vmul.f32 %v2339_v32, %v706_v57  ;;  %v1129_v37 = vmul.f32 %v2344_v35, %v2889_v11 }
 0x12e   : > { %v2971_v59 = vadd.f32 %v996_v39, %v960_v52  ;;  %v1364_v33 = vadd.f32 %v1332_v29, %v1296_v61  ;;  %v893_v6 = vadd.f32 %v2875_v28, %v861_v31  ;;  %v997_v13 = vmul.f32 %v2333_v27, %v755_v25 }
 0x12f   : > { %v1161_v42 = vadd.f32 %v1129_v37, %v1093_v62  ;;  %v1265_v2 = vmul.f32 %v2361_v44, %v706_v57  ;;  %v645_v63 = vrot.slane %v2953_v15, 7  ;;  %v815_v46 = vsel %vm710_vm1, %v754_v54, 0.0 }
 0x130   : > { %v1432_v49 = vadd.f32 %v1400_v47, %v1364_v33  ;;  %v961_v1 = vadd.f32 %v929_v56, %v893_v6  ;;  %v1199_v11 = vmul.f32 %v2359_v43, %v755_v25  ;;  %v1333_v14 = vmul.f32 %v2364_v48, %v2938_v21 }
 0x131   : > { %v1229_v34 = vadd.f32 %v1197_v17, %v1161_v42  ;;  %v646_v50 = vsel %vm601_vm0, %v644_v7, %v645_v63  ;;  %v1094_v23 = vadd.f32 %v1062_v55, %v2923_v58  ;;  %v1130_v8 = vmul.f32 %v2344_v35, %v2905_v0 }
 0x132   : > { %1464 = vst [vmem:[%s2442_s9 + $0xb8] sm:$0xff] %v1432_v49  ;;  %v1401_v30 = vmul.f32 %v2371_v51, %v755_v25  ;;  %v862_v40 = vmul.f32 %v2322_v22, %v646_v50  ;;  %v930_v24 = vmul.f32 %v2331_v26, %v2953_v15  ;;  %v998_v17 = vmul.f32 %v2333_v27, %v815_v46 }
 0x133   : > { %v1029_v5 = vadd.f32 %v997_v13, %v961_v1  ;;  %v1297_v39 = vadd.f32 %v1265_v2, %v1229_v34  ;;  %v1162_v45 = vadd.f32 %v1130_v8, %v1094_v23  ;;  %v1266_v58 = vmul.f32 %v2361_v44, %v646_v50  ;;  %v465_v23 = vld [vmem:[%s2280_s29 + $0xf0] sm:$0xff] }
 0x134   : > { %v894_v10 = vadd.f32 %v2875_v28, %v862_v40  ;;  %v1334_v0 = vmul.f32 %v2364_v48, %v2953_v15  ;;  %v647_v53 = vrot.slane %v2986_v16, 7  ;;  %v756_v29 = vrot.slane %v2986_v16, 1 }
 0x135   : > { %v1365_v7 = vadd.f32 %v1333_v14, %v1297_v39  ;;  %v1230_v19 = vadd.f32 %v1198_v18, %v1162_v45  ;;  %v1402_v47 = vmul.f32 %v2371_v51, %v815_v46  ;;  %v757_v41 = vrot.slane %v2999_v20, 1 }
 0x136   : > { %v962_v54 = vadd.f32 %v930_v24, %v894_v10  ;;  %v707_v60 = vsel %vm601_vm0, 0.0, %v647_v53  ;;  %v1095_v52 = vadd.f32 %v1063_v12, %v2945_v38  ;;  %v1131_v57 = vmul.f32 %v2344_v35, %v2938_v21 }
 0x137   : > { %v1433_v62 = vadd.f32 %v1401_v30, %v1365_v7  ;;  %v1298_v61 = vadd.f32 %v1266_v58, %v1230_v19  ;;  %v758_v25 = vsel %vm710_vm1, %v756_v29, %v757_v41  ;;  %v863_v31 = vmul.f32 %v2322_v22, %v707_v60 }
 0x138   : > { %v1064_v56 = vmul.f32 %v2339_v32, %v646_v50  ;;  %v1200_v55 = vmul.f32 %v2359_v43, %v815_v46  ;;  %v931_v18 = vmul.f32 %v2331_v26, %v2986_v16  ;;  %v1163_v37 = vadd.f32 %v1131_v57, %v1095_v52 }
 0x139   : > { %1465 = vst [vmem:[%s2442_s9 + $0xc0] sm:$0xff] %v1433_v62  ;;  %v1030_v33 = vadd.f32 %v998_v17, %v962_v54  ;;  %v1366_v38 = vadd.f32 %v1334_v0, %v1298_v61  ;;  %v895_v21 = vadd.f32 %v2875_v28, %v863_v31  ;;  %v1267_v12 = vmul.f32 %v2361_v44, %v707_v60  ;;  %v466_v0 = vld [vmem:[%s2280_s29 + $0xf8] sm:$0xff] }
 0x13a   : > { %v999_v6 = vmul.f32 %v2333_v27, %v758_v25  ;;  %v1231_v13 = vadd.f32 %v1199_v11, %v1163_v37  ;;  %v1335_v42 = vmul.f32 %v2364_v48, %v2986_v16  ;;  %v648_v2 = vrot.slane %v2999_v20, 7 }
 0x13b   : > { %v1434_v63 = vadd.f32 %v1402_v47, %v1366_v38  ;;  %v1065_v46 = vmul.f32 %v2339_v32, %v707_v60  ;;  %v1201_v49 = vmul.f32 %v2359_v43, %v758_v25  ;;  %v816_v1 = vsel %vm710_vm1, %v757_v41, 0.0 }
 0x13c   : > { %v1299_v14 = vadd.f32 %v1267_v12, %v1231_v13  ;;  %v1403_v34 = vmul.f32 %v2371_v51, %v758_v25  ;;  %v649_v50 = vsel %vm601_vm0, %v647_v53, %v648_v2  ;;  %v1096_v11 = vadd.f32 %v1064_v56, %v2971_v59 }
 0x13d   : > { %1466 = vst [vmem:[%s2442_s9 + $0xc8] sm:$0xff] %v1434_v63  ;;  %v963_v8 = vadd.f32 %v931_v18, %v895_v21  ;;  %v864_v30 = vmul.f32 %v2322_v22, %v649_v50  ;;  %v932_v40 = vmul.f32 %v2331_v26, %v2999_v20  ;;  %v1132_v24 = vmul.f32 %v2344_v35, %v2953_v15 }
 0x13e   : > { %v1367_v17 = vadd.f32 %v1335_v42, %v1299_v14  ;;  %v1000_v39 = vmul.f32 %v2333_v27, %v816_v1  ;;  %v1066_v45 = vmul.f32 %v2339_v32, %v649_v50  ;;  %v1268_v58 = vmul.f32 %v2361_v44, %v649_v50 }
 0x13f   : > { %v896_v59 = vadd.f32 %v2875_v28, %v864_v30  ;;  %v1164_v10 = vadd.f32 %v1132_v24, %v1096_v11  ;;  %v1336_v22 = vmul.f32 %v2364_v48, %v2999_v20  ;;  %v650_v53 = vrot.slane %v465_v23, 7 }
 0x140   : > { %v1435_v26 = vadd.f32 %v1403_v34, %v1367_v17  ;;  %v759_v29 = vrot.slane %v465_v23, 1  ;;  %v760_v7 = vrot.slane %v466_v0, 1  ;;  %v1097_v15 = vadd.f32 %v1065_v46, %v1029_v5 }
 0x141   : > { %v964_v19 = vadd.f32 %v932_v40, %v896_v59  ;;  %v1232_v47 = vadd.f32 %v1200_v55, %v1164_v10  ;;  %v708_v27 = vsel %vm601_vm0, 0.0, %v650_v53  ;;  %v1133_v41 = vmul.f32 %v2344_v35, %v2986_v16 }
 0x142   : > { %v1031_v54 = vadd.f32 %v999_v6, %v963_v8  ;;  %1467 = vst [vmem:[%s2442_s9 + $0xd0] sm:$0xff] %v1435_v26  ;;  %v1202_v28 = vmul.f32 %v2359_v43, %v816_v1  ;;  %v1067_v60 = vmul.f32 %v2339_v32, %v708_v27  ;;  %v1404_v57 = vmul.f32 %v2371_v51, %v816_v1 }
 0x143   : > { %v1300_v52 = vadd.f32 %v1268_v58, %v1232_v47  ;;  %v1165_v62 = vadd.f32 %v1133_v41, %v1097_v15  ;;  %v1269_v61 = vmul.f32 %v2361_v44, %v708_v27  ;;  %v761_v5 = vsel %vm710_vm1, %v759_v29, %v760_v7 }
 0x144   : > { %v1337_v25 = vmul.f32 %v2364_v48, %v465_v23  ;;  %v651_v31 = vrot.slane %v466_v0, 7  ;;  %v1098_v56 = vadd.f32 %v1066_v45, %v1030_v33  ;;  %v1032_v16 = vadd.f32 %v1000_v39, %v964_v19 }
 0x145   : > { %v1368_v55 = vadd.f32 %v1336_v22, %v1300_v52  ;;  %v1233_v18 = vadd.f32 %v1201_v49, %v1165_v62  ;;  %v1134_v37 = vmul.f32 %v2344_v35, %v2999_v20  ;;  %v1405_v38 = vmul.f32 %v2371_v51, %v761_v5 }
 0x146   : > { %v652_v21 = vsel %vm601_vm0, %v650_v53, %v651_v31  ;;  %v817_v12 = vsel %vm710_vm1, %v760_v7, 0.0  ;;  %v1099_v6 = vadd.f32 %v1067_v60, %v1031_v54  ;;  %v1203_v33 = vmul.f32 %v2359_v43, %v761_v5 }
 0x147   : > { %v1436_v13 = vadd.f32 %v1404_v57, %v1368_v55  ;;  %v1301_v42 = vadd.f32 %v1269_v61, %v1233_v18  ;;  %v1068_v2 = vmul.f32 %v2339_v32, %v652_v21  ;;  %v1166_v63 = vadd.f32 %v1134_v37, %v1098_v56 }
 0x148   : > { %v1270_v46 = vmul.f32 %v2361_v44, %v652_v21  ;;  %v1135_v49 = vmul.f32 %v2344_v35, %v465_v23  ;;  %v1338_v14 = vmul.f32 %v2364_v48, %v466_v0  ;;  %v1204_v50 = vmul.f32 %v2359_v43, %v817_v12 }
 0x149   : > { %1468 = vst [vmem:[%s2442_s9 + $0xd8] sm:$0xff] %v1436_v13  ;;  %v1369_v20 = vadd.f32 %v1337_v25, %v1301_v42  ;;  %v1234_v1 = vadd.f32 %v1202_v28, %v1166_v63  ;;  %v1100_v34 = vadd.f32 %v1068_v2, %v1032_v16  ;;  %v1271_v32 = vmul.f32 %v2361_v44, %v2310_v9 }
 0x14a   : > { %v1167_v11 = vadd.f32 %v1135_v49, %v1099_v6  ;;  %v1136_v8 = vmul.f32 %v2344_v35, %v466_v0  ;;  %v1406_v23 = vmul.f32 %v2371_v51, %v817_v12  ;;  %v1339_v17 = vmul.f32 0.0, %v2364_v48 }
 0x14b   : > { %v1437_v30 = vadd.f32 %v1405_v38, %v1369_v20  ;;  %v1302_v40 = vadd.f32 %v1270_v46, %v1234_v1  ;;  %v1272_v43 = vmul.f32 %v2361_v44, %v2295_v3  ;;  %v1407_v35 = vmul.f32 %v2371_v51, %v2297_v4 }
 0x14c   : > { %v1235_v24 = vadd.f32 %v1203_v33, %v1167_v11  ;;  %v1168_v39 = vadd.f32 %v1136_v8, %v1100_v34  ;;  %v1408_v48 = vmul.f32 %v2371_v51, %v2348_v36 }
 0x14d   : > { %1469 = vst [vmem:[%s2442_s9 + $0xe0] sm:$0xff] %v1437_v30  ;;  %v1370_v45 = vadd.f32 %v1338_v14, %v1302_v40 }
 0x14e   : > { %v1303_v9 = vadd.f32 %v1271_v32, %v1235_v24  ;;  %v1236_v58 = vadd.f32 %v1204_v50, %v1168_v39 }
 0x14f   : > { %v1438_v59 = vadd.f32 %v1406_v23, %v1370_v45 }
 0x150   : > { %v1371_v10 = vadd.f32 %v1339_v17, %v1303_v9  ;;  %v1304_v22 = vadd.f32 %v1272_v43, %v1236_v58 }
 0x151   : > { %1470 = vst [vmem:[%s2442_s9 + $0xe8] sm:$0xff] %v1438_v59 }
 0x152   : > { %v1439_v3 = vadd.f32 %v1407_v35, %v1371_v10  ;;  %v1372_v44 = vadd.f32 %v1339_v17, %v1304_v22 }
 0x154   : > { %1471 = vst [vmem:[%s2442_s9 + $0xf0] sm:$0xff] %v1439_v3  ;;  %v1440_v4 = vadd.f32 %v1408_v48, %v1372_v44 }
 0x156   : > { %1472 = vst [vmem:[%s2442_s9 + $0xf8] sm:$0xff] %v1440_v4 }
 0x157   : > { %1913 = shalt.err (!%p1910_p12)
}
 0x158   : > { %s1914_s25 = scalar_lea.hbm %s3082_s24, 4096  ;;  %s1918_s5 = scalar_lea.hbm %s3189_s27, 8192 }
 0x159   : > { %p1915_p0 = scmp.ne.s32.totalorder %s3082_s24, %s1914_s25  ;;  %p1919_p11 = scmp.lt.u32.totalorder %s3082_s24, %s3189_s27 }
 0x15a   : > { %p1920_p2 = scmp.lt.u32.totalorder %s1918_s5, %s1914_s25  ;;  %p1922_p5 = scmp.lt.u32.totalorder %s1914_s25, %s3082_s24 }
 0x15b   : > { %p1916_p4 = pnand %p1915_p0, %p3190_p10 }
 0x15c   : > { %p1921_p1 = por %p1920_p2, %p1919_p11 }
 0x15d   : > { %p1917_p7 = pneg %p1916_p4 }
 0x15e   : > { %p1923_p13 = por %p1922_p5, %p1921_p1 }
 0x160   : > { %p1924_p3 = pnand %p1923_p13, %p1917_p7 }
 0x162   : > { %1927 = shalt.err (!%p1924_p3)
}
 0x163   : > { %s2002_s13 = smov 128   ;;  %s2003_s26 = smov 8  }
 0x164   : > { %1701 = dma.vmem_to_hbm [thread:$0]  (%p3190_p10), %s3084_s11, 4096, %s3082_s24, %s1474_s1, %s2002_s13, %s2002_s13, %s2003_s26  }
 0x165 PF: > { %s3191_s8 = sld [smem:[#allocation16_spill]]  ;;  %s3192_s7 = sld [smem:[#allocation22_spill]] }
 0x166   : > { %s3193_s9 = sld [smem:[#allocation19_spill]] }
 0x16b   : > { %s1506_s30 = sand.u32 1, %s3191_s8   ;;  %p3194_p9 = scmp.ne.s32.totalorder %s3192_s7, 0 }
 0x16c   : > { %p3195_p6 = scmp.ge.s32.totalorder %s3193_s9, 2  ;;  %s1507_s20 = scalar_lea.sflag [#allocation5], %s1506_s30 }
 0x16e   : > { %p1718_p8 = pnand %p3195_p6, %p3194_p9 }
 0x170   : > { %1965 = dma.done.wait (!%p1718_p8), %s1507_s20, 4096  }
 0x171   : > { %1967 = vsyncadd (!%p1718_p8), %s1507_s20, 4294963200  ;;  %s25_s23 = sadd.s32 1, %s3193_s9   ;;  %s3196_s12 = sld [smem:[#allocation17_spill]] }
 0x172   : > { %p22_p12 = scmp.ge.s32.totalorder %s25_s23, 4   ;;  %s3197_s20 = sld [smem:[#allocation21_spill]] }
 0x173   : > { %s3198_s21 = sld [smem:[#allocation18_spill]]  ;;  %s3199_s22 = sld [smem:[#allocation20_spill]] }
 0x174   : > { %s3200_s18 = smov %s1974_s19  ;;  %24 = sbr.rel (!%p22_p12) target bundleno = 12 (0xc), region = 136 }
 0x177   : > { %s3201_s19 = smov %s3196_s12 }
 0x17b   :  { %1512 = vsyncpa [#allocation4], 1 }
 0x17c   :  { %1514 = vsyncpa [#allocation4 + $0x1], 1 }
 0x17d   :  { %1515 = vsyncpa [#allocation7], 1 }
 0x17e   :  { %1517 = vsyncpa [#allocation7 + $0x1], 1 }
 0x17f   :  { %1518 = vsyncpa [#allocation10], 1 }
 0x180   :  { %1519 = vsyncpa [#allocation5], 1 }
 0x181   :  { %1521 = vsyncpa [#allocation5 + $0x1], 1 }

</bundles_post_ra>
